<compile_context>
chip_gen: v7x
topology: tpu7x:2x2x1
jax: 0.10.0
libtpu: 0.0.40
codegen_flags: <defaults>
</compile_context>

<pallas_src>
import functools
import math

import jax
import jax.numpy as jnp
from jax.experimental import pallas as pl
from jax.experimental.pallas import tpu as pltpu

# ---- small stand-in config for bert-base (768/12/12 -> 128/4/2) ----
BATCH = 2
SEQ = 16
HIDDEN = 128
N_HEADS = 4
HEAD_DIM = HIDDEN // N_HEADS
FFN = 256
N_LAYERS = 2
VOCAB = 64
TYPE_VOCAB = 2
MAX_POS = 32
LN_EPS = 1e-12
NEG_MASK = -10000.0


# --------------------------- Pallas kernels ---------------------------------

def _layernorm(x, g, b):
    # all-f32 math (v5e has no bf16 VPU)
    mean = jnp.mean(x, axis=-1, keepdims=True)
    var = jnp.mean(jnp.square(x - mean), axis=-1, keepdims=True)
    inv = jax.lax.rsqrt(var + LN_EPS)
    return (x - mean) * inv * g + b


def _encoder_kernel(emb_ref, bias_ref, eg_ref, eb_ref,
                    qkv_w_ref, qkv_b_ref, o_w_ref, o_b_ref,
                    ln1_g_ref, ln1_b_ref,
                    ff1_w_ref, ff1_b_ref, ff2_w_ref, ff2_b_ref,
                    ln2_g_ref, ln2_b_ref,
                    out_ref, acc_ref,
                    *, n_heads, head_dim, scale):
    """One grid step = one (batch, layer) pair; activation lives in acc_ref."""
    l = pl.program_id(1)
    n_layers = pl.num_programs(1)

    # Layer-0 prologue: embedding LayerNorm straight into the resident VMEM
    # activation (fuses the old separate emb-LN kernel).
    @pl.when(l == 0)
    def _():
        acc_ref[...] = _layernorm(emb_ref[0].astype(jnp.float32),
                                  eg_ref[...].astype(jnp.float32),
                                  eb_ref[...].astype(jnp.float32))

    x = acc_ref[...]                                    # (S, H) f32, VMEM-resident
    seq, hidden = x.shape

    # --- attention block: fused QKV matmul (bf16 MXU inputs, f32 accumulate) ---
    qkv = jnp.dot(x.astype(jnp.bfloat16), qkv_w_ref[0],
                  preferred_element_type=jnp.float32) + qkv_b_ref[0]   # (S, 3H)
    q = qkv[:, :hidden] * scale
    k = qkv[:, hidden:2 * hidden]
    v = qkv[:, 2 * hidden:]

    bias = bias_ref[0]                                  # (1, S) additive mask bias

    # Split heads by slicing the lane dimension; ctx written back lane-dense.
    nt_dims = (((1,), (1,)), ((), ()))                  # q @ k^T via dot_general
    ctx_parts = []
    for h in range(n_heads):
        sl = slice(h * head_dim, (h + 1) * head_dim)
        s_h = jax.lax.dot_general(q[:, sl], k[:, sl], nt_dims,
                                  preferred_element_type=jnp.float32) + bias
        m = jnp.max(s_h, axis=-1, keepdims=True)
        p = jnp.exp(s_h - m)
        p = p * pl.reciprocal(jnp.sum(p, axis=-1, keepdims=True), approx=True)
        ctx_parts.append(jnp.dot(p, v[:, sl],
                                 preferred_element_type=jnp.float32))  # (S, DH)
    ctx = jnp.concatenate(ctx_parts, axis=-1)           # (S, H) lane-dense

    attn_out = jnp.dot(ctx.astype(jnp.bfloat16), o_w_ref[0],
                       preferred_element_type=jnp.float32) + o_b_ref[0]
    x = _layernorm(attn_out + x, ln1_g_ref[0], ln1_b_ref[0])

    # --- FFN ---
    ff = jnp.dot(x.astype(jnp.bfloat16), ff1_w_ref[0],
                 preferred_element_type=jnp.float32) + ff1_b_ref[0]
    # TODO(synk): HF BERT uses exact erf-GELU; tanh approximation used here.
    ff = jax.nn.gelu(ff, approximate=True)
    ff = jnp.dot(ff.astype(jnp.bfloat16), ff2_w_ref[0],
                 preferred_element_type=jnp.float32) + ff2_b_ref[0]
    x = _layernorm(ff + x, ln2_g_ref[0], ln2_b_ref[0])

    acc_ref[...] = x

    @pl.when(l == n_layers - 1)
    def _():
        out_ref[0] = x.astype(out_ref.dtype)


def encoder_forward(emb, attn_bias, params):
    """All encoder layers (plus embedding LayerNorm) in a single pallas_call."""
    b, s, h = emb.shape
    n_layers = params["qkv_w"].shape[0]
    ffn = params["ff1_w"].shape[-1]

    kernel = functools.partial(_encoder_kernel, n_heads=N_HEADS,
                               head_dim=HEAD_DIM, scale=1.0 / math.sqrt(HEAD_DIM))

    batch_map = lambda i, l: (i, 0, 0)     # per-sequence blocks
    layer_map = lambda i, l: (l, 0, 0)     # stacked per-layer weights
    shared_map = lambda i, l: (0, 0)       # shared (embedding LN) params

    return pl.pallas_call(
        kernel,
        out_shape=jax.ShapeDtypeStruct((b, s, h), jnp.float32),
        grid_spec=pltpu.PrefetchScalarGridSpec(
            num_scalar_prefetch=0,
            grid=(b, n_layers),
            in_specs=[
                pl.BlockSpec((1, s, h), batch_map),        # embeddings
                pl.BlockSpec((1, 1, s), batch_map),        # additive attn bias
                pl.BlockSpec((1, h), shared_map),          # emb LN gamma
                pl.BlockSpec((1, h), shared_map),          # emb LN beta
                pl.BlockSpec((1, h, 3 * h), layer_map),    # fused QKV weight
                pl.BlockSpec((1, 1, 3 * h), layer_map),    # fused QKV bias
                pl.BlockSpec((1, h, h), layer_map),        # output proj W
                pl.BlockSpec((1, 1, h), layer_map),        # output proj b
                pl.BlockSpec((1, 1, h), layer_map),        # ln1 gamma
                pl.BlockSpec((1, 1, h), layer_map),        # ln1 beta
                pl.BlockSpec((1, h, ffn), layer_map),      # ffn1 W
                pl.BlockSpec((1, 1, ffn), layer_map),      # ffn1 b
                pl.BlockSpec((1, ffn, h), layer_map),      # ffn2 W
                pl.BlockSpec((1, 1, h), layer_map),        # ffn2 b
                pl.BlockSpec((1, 1, h), layer_map),        # ln2 gamma
                pl.BlockSpec((1, 1, h), layer_map),        # ln2 beta
            ],
            out_specs=pl.BlockSpec((1, s, h), batch_map),
            scratch_shapes=[pltpu.VMEM((s, h), jnp.float32)],
        ),
        compiler_params=pltpu.CompilerParams(
            dimension_semantics=("parallel", "arbitrary")),
    )(emb, attn_bias,
      params["emb_ln_g"], params["emb_ln_b"],
      params["qkv_w"], params["qkv_b"], params["o_w"], params["o_b"],
      params["ln1_g"], params["ln1_b"],
      params["ff1_w"], params["ff1_b"], params["ff2_w"], params["ff2_b"],
      params["ln2_g"], params["ln2_b"])


def _head_loss_kernel(x_ref, ws_ref, we_ref, bs_ref, be_ref, sp_ref, ep_ref,
                      start_ref, end_ref, loss_ref, *, ignore_index):
    """Span head (VPU dot-reductions, no N=2 MXU matmul) + both CE losses."""
    x = x_ref[...].astype(jnp.float32)                         # (B, S, H)
    start = jnp.sum(x * ws_ref[...].astype(jnp.float32), axis=-1) + bs_ref[...]
    end = jnp.sum(x * we_ref[...].astype(jnp.float32), axis=-1) + be_ref[...]
    start_ref[...] = start.astype(start_ref.dtype)             # (B, S)
    end_ref[...] = end.astype(end_ref.dtype)

    # CrossEntropy over sequence positions.  NOTE: the reference module computes
    # BOTH losses from start_logits (end_logits is not used in the loss).
    m = jnp.max(start, axis=-1, keepdims=True)                 # (B, 1)
    lse = jnp.log(jnp.sum(jnp.exp(start - m), axis=-1, keepdims=True)) + m
    cols = jax.lax.broadcasted_iota(jnp.int32, start.shape, 1)  # (B, S)

    def ce(lab_ref):
        labels = jnp.clip(lab_ref[...], 0, ignore_index)        # (B, 1)
        onehot = (cols == labels).astype(jnp.float32)
        picked = jnp.sum(onehot * start, axis=-1, keepdims=True)
        valid = (labels != ignore_index).astype(jnp.float32)
        tot = jnp.sum((lse - picked) * valid, keepdims=True)    # (1, 1)
        cnt = jnp.sum(valid, keepdims=True)                     # (1, 1)
        return tot, cnt

    s_tot, s_cnt = ce(sp_ref)
    e_tot, e_cnt = ce(ep_ref)
    # TODO(synk): 0/0 -> NaN if every label == ignore_index (same as torch).
    loss_ref[...] = 0.5 * (s_tot / s_cnt + e_tot / e_cnt)


def head_and_loss(x, w_start, w_end, b_start, b_end, sp, ep, *, ignore_index):
    b, s, _ = x.shape
    kernel = functools.partial(_head_loss_kernel, ignore_index=ignore_index)
    return pl.pallas_call(
        kernel,
        out_shape=(jax.ShapeDtypeStruct((b, s), jnp.float32),
                   jax.ShapeDtypeStruct((b, s), jnp.float32),
                   jax.ShapeDtypeStruct((1, 1), jnp.float32)),
    )(x, w_start, w_end, b_start, b_end, sp, ep)


# --------------------------- model glue --------------------------------------

def init_params(key):
    def w_init(k, shape):
        return 0.02 * jax.random.normal(k, shape, dtype=jnp.float32)

    keys = iter(jax.random.split(key, 32))
    params = {
        "word_emb": w_init(next(keys), (VOCAB, HIDDEN)),
        "pos_emb": w_init(next(keys), (MAX_POS, HIDDEN)),
        "type_emb": w_init(next(keys), (TYPE_VOCAB, HIDDEN)),
        "emb_ln_g": jnp.ones((1, HIDDEN), jnp.float32),
        "emb_ln_b": jnp.zeros((1, HIDDEN), jnp.float32),
        # Stacked per-layer weights; matmul weights stored bf16 (MXU inputs),
        # biases / LayerNorm params stay f32 (f32 elementwise epilogues).
        "qkv_w": w_init(next(keys), (N_LAYERS, HIDDEN, 3 * HIDDEN)).astype(jnp.bfloat16),
        "qkv_b": jnp.zeros((N_LAYERS, 1, 3 * HIDDEN), jnp.float32),
        "o_w": w_init(next(keys), (N_LAYERS, HIDDEN, HIDDEN)).astype(jnp.bfloat16),
        "o_b": jnp.zeros((N_LAYERS, 1, HIDDEN), jnp.float32),
        "ln1_g": jnp.ones((N_LAYERS, 1, HIDDEN), jnp.float32),
        "ln1_b": jnp.zeros((N_LAYERS, 1, HIDDEN), jnp.float32),
        "ff1_w": w_init(next(keys), (N_LAYERS, HIDDEN, FFN)).astype(jnp.bfloat16),
        "ff1_b": jnp.zeros((N_LAYERS, 1, FFN), jnp.float32),
        "ff2_w": w_init(next(keys), (N_LAYERS, FFN, HIDDEN)).astype(jnp.bfloat16),
        "ff2_b": jnp.zeros((N_LAYERS, 1, HIDDEN), jnp.float32),
        "ln2_g": jnp.ones((N_LAYERS, 1, HIDDEN), jnp.float32),
        "ln2_b": jnp.zeros((N_LAYERS, 1, HIDDEN), jnp.float32),
        # Span head as two lane-dense row vectors + scalar biases.
        "head_w_start": w_init(next(keys), (1, 1, HIDDEN)),
        "head_w_end": w_init(next(keys), (1, 1, HIDDEN)),
        "head_b_start": jnp.zeros((1, 1), jnp.float32),
        "head_b_end": jnp.zeros((1, 1), jnp.float32),
    }
    return params


def squad_forward(params, input_ids, attention_mask, token_type_ids,
                  start_positions=None, end_positions=None):
    b, s = input_ids.shape
    # Embedding gathers stay in JAX (data-dependent gather = glue, not kernel).
    emb = (params["word_emb"][input_ids]
           + params["pos_emb"][jnp.arange(s)][None, :, :]
           + params["type_emb"][token_type_ids])                       # (B,S,H) f32
    # Additive attention bias computed once per forward (shared by all layers).
    attn_bias = ((1.0 - attention_mask.astype(jnp.float32)) * NEG_MASK).reshape(b, 1, s)

    x = encoder_forward(emb, attn_bias, params)                        # (B,S,H) f32

    have_labels = start_positions is not None and end_positions is not None
    sp = (start_positions if have_labels
          else jnp.zeros((b,), jnp.int32)).reshape(b, 1).astype(jnp.int32)
    ep = (end_positions if have_labels
          else jnp.zeros((b,), jnp.int32)).reshape(b, 1).astype(jnp.int32)

    ignore_index = s                                                   # start_logits.size(1)
    start_logits, end_logits, loss = head_and_loss(
        x, params["head_w_start"], params["head_w_end"],
        params["head_b_start"], params["head_b_end"], sp, ep,
        ignore_index=ignore_index)

    mean_loss = loss[0, 0] if have_labels else None
    return start_logits, end_logits, mean_loss


if __name__ == "__main__":
    key = jax.random.PRNGKey(0)
    pkey, ikey, skey, ekey = jax.random.split(key, 4)
    params = init_params(pkey)

    input_ids = jax.random.randint(ikey, (BATCH, SEQ), 0, VOCAB, dtype=jnp.int32)
    attention_mask = jnp.ones((BATCH, SEQ), dtype=jnp.int32).at[:, SEQ - 3:].set(0)
    token_type_ids = jnp.concatenate(
        [jnp.zeros((BATCH, SEQ // 2), jnp.int32),
         jnp.ones((BATCH, SEQ // 2), jnp.int32)], axis=-1)
    start_positions = jax.random.randint(skey, (BATCH,), 0, SEQ, dtype=jnp.int32)
    end_positions = jax.random.randint(ekey, (BATCH,), 0, SEQ, dtype=jnp.int32)

    fwd = jax.jit(squad_forward)
    start_logits, end_logits, mean_loss = fwd(
        params, input_ids, attention_mask, token_type_ids,
        start_positions, end_positions)
    jax.block_until_ready((start_logits, end_logits, mean_loss))

    assert start_logits.shape == (BATCH, SEQ)
    assert end_logits.shape == (BATCH, SEQ)
    assert mean_loss.shape == ()
    print("KERNEL_OK")
</pallas_src>

<mosaic_0001>
module attributes {stable_mosaic.version = 11 : i64} {
  func.func @_head_loss_kernel(%arg0: memref<2x16x128xf32, #tpu.memory_space<vmem>>, %arg1: memref<1x1x128xf32, #tpu.memory_space<vmem>>, %arg2: memref<1x1x128xf32, #tpu.memory_space<vmem>>, %arg3: memref<1x1xf32, #tpu.memory_space<vmem>>, %arg4: memref<1x1xf32, #tpu.memory_space<vmem>>, %arg5: memref<2x1xi32, #tpu.memory_space<vmem>>, %arg6: memref<2x1xi32, #tpu.memory_space<vmem>>, %arg7: memref<2x16xf32, #tpu.memory_space<vmem>>, %arg8: memref<2x16xf32, #tpu.memory_space<vmem>>, %arg9: memref<1x1xf32, #tpu.memory_space<vmem>>) attributes {dimension_semantics = [], scalar_prefetch = 0 : i64, scratch_operands = 0 : i64, tpu.core_type = #tpu.core_type<tc>} {
    %c0 = arith.constant 0 : index
    %c0_0 = arith.constant 0 : index
    %c0_1 = arith.constant 0 : index
    %0 = vector.load %arg0[%c0, %c0_0, %c0_1] : memref<2x16x128xf32, #tpu.memory_space<vmem>>, vector<2x16x128xf32>
    %c0_2 = arith.constant 0 : index
    %c0_3 = arith.constant 0 : index
    %c0_4 = arith.constant 0 : index
    %1 = vector.load %arg1[%c0_2, %c0_3, %c0_4] : memref<1x1x128xf32, #tpu.memory_space<vmem>>, vector<1x1x128xf32>
    %2 = vector.broadcast %1 : vector<1x1x128xf32> to vector<2x16x128xf32>
    %3 = arith.mulf %0, %2 : vector<2x16x128xf32>
    %cst = arith.constant dense<0.000000e+00> : vector<2x16xf32>
    %4 = vector.multi_reduction <add>, %3, %cst [2] : vector<2x16x128xf32> to vector<2x16xf32>
    %c0_5 = arith.constant 0 : index
    %c0_6 = arith.constant 0 : index
    %5 = vector.load %arg3[%c0_5, %c0_6] : memref<1x1xf32, #tpu.memory_space<vmem>>, vector<1x1xf32>
    %6 = vector.broadcast %5 : vector<1x1xf32> to vector<2x16xf32>
    %7 = arith.addf %4, %6 : vector<2x16xf32>
    %c0_7 = arith.constant 0 : index
    %c0_8 = arith.constant 0 : index
    %c0_9 = arith.constant 0 : index
    %8 = vector.load %arg2[%c0_7, %c0_8, %c0_9] : memref<1x1x128xf32, #tpu.memory_space<vmem>>, vector<1x1x128xf32>
    %9 = vector.broadcast %8 : vector<1x1x128xf32> to vector<2x16x128xf32>
    %10 = arith.mulf %0, %9 : vector<2x16x128xf32>
    %cst_10 = arith.constant dense<0.000000e+00> : vector<2x16xf32>
    %11 = vector.multi_reduction <add>, %10, %cst_10 [2] : vector<2x16x128xf32> to vector<2x16xf32>
    %c0_11 = arith.constant 0 : index
    %c0_12 = arith.constant 0 : index
    %12 = vector.load %arg4[%c0_11, %c0_12] : memref<1x1xf32, #tpu.memory_space<vmem>>, vector<1x1xf32>
    %13 = vector.broadcast %12 : vector<1x1xf32> to vector<2x16xf32>
    %14 = arith.addf %11, %13 : vector<2x16xf32>
    %c0_13 = arith.constant 0 : index
    %c0_14 = arith.constant 0 : index
    %15 = vector.load %arg7[%c0_13, %c0_14] : memref<2x16xf32, #tpu.memory_space<vmem>>, vector<2x16xf32>
    tpu.vector_store %arg7[%c0_13, %c0_14], %7 {strides = array<i32>} : memref<2x16xf32, #tpu.memory_space<vmem>>, vector<2x16xf32>,
    %c0_15 = arith.constant 0 : index
    %c0_16 = arith.constant 0 : index
    %16 = vector.load %arg8[%c0_15, %c0_16] : memref<2x16xf32, #tpu.memory_space<vmem>>, vector<2x16xf32>
    tpu.vector_store %arg8[%c0_15, %c0_16], %14 {strides = array<i32>} : memref<2x16xf32, #tpu.memory_space<vmem>>, vector<2x16xf32>,
    %cst_17 = arith.constant dense<0xFF800000> : vector<2xf32>
    %17 = vector.multi_reduction <maximumf>, %7, %cst_17 [1] : vector<2x16xf32> to vector<2xf32>
    %18 = vector.shape_cast %17 : vector<2xf32> to vector<2x1xf32>
    %19 = vector.broadcast %18 : vector<2x1xf32> to vector<2x16xf32>
    %20 = arith.subf %7, %19 : vector<2x16xf32>
    %21 = math.exp %20 : vector<2x16xf32>
    %cst_18 = arith.constant dense<0.000000e+00> : vector<2xf32>
    %22 = vector.multi_reduction <add>, %21, %cst_18 [1] : vector<2x16xf32> to vector<2xf32>
    %23 = vector.shape_cast %22 : vector<2xf32> to vector<2x1xf32>
    %24 = math.log %23 : vector<2x1xf32>
    %25 = arith.addf %24, %18 : vector<2x1xf32>
    %26 = tpu.iota {dimensions = array<i32: 1>} : vector<2x16xi32>
    %c0_19 = arith.constant 0 : index
    %c0_20 = arith.constant 0 : index
    %27 = vector.load %arg5[%c0_19, %c0_20] : memref<2x1xi32, #tpu.memory_space<vmem>>, vector<2x1xi32>
    %c0_i32 = arith.constant 0 : i32
    %c16_i32 = arith.constant 16 : i32
    %28 = vector.broadcast %c0_i32 : i32 to vector<2x1xi32>
    %29 = arith.maxsi %28, %27 : vector<2x1xi32>
    %30 = vector.broadcast %c16_i32 : i32 to vector<2x1xi32>
    %31 = arith.minsi %30, %29 : vector<2x1xi32>
    %32 = vector.broadcast %31 : vector<2x1xi32> to vector<2x16xi32>
    %33 = arith.cmpi eq, %26, %32 : vector<2x16xi32>
    %34 = arith.extui %33 : vector<2x16xi1> to vector<2x16xi32>
    %35 = arith.sitofp %34 : vector<2x16xi32> to vector<2x16xf32>
    %36 = arith.mulf %35, %7 : vector<2x16xf32>
    %cst_21 = arith.constant dense<0.000000e+00> : vector<2xf32>
    %37 = vector.multi_reduction <add>, %36, %cst_21 [1] : vector<2x16xf32> to vector<2xf32>
    %38 = vector.shape_cast %37 : vector<2xf32> to vector<2x1xf32>
    %c16_i32_22 = arith.constant 16 : i32
    %39 = vector.broadcast %c16_i32_22 : i32 to vector<2x1xi32>
    %40 = arith.cmpi ne, %31, %39 : vector<2x1xi32>
    %41 = arith.extui %40 : vector<2x1xi1> to vector<2x1xi32>
    %42 = arith.sitofp %41 : vector<2x1xi32> to vector<2x1xf32>
    %43 = arith.subf %25, %38 : vector<2x1xf32>
    %44 = arith.mulf %43, %42 : vector<2x1xf32>
    %45 = vector.shape_cast %44 : vector<2x1xf32> to vector<1x2x1xf32>
    %cst_23 = arith.constant dense<0.000000e+00> : vector<1xf32>
    %46 = vector.multi_reduction <add>, %45, %cst_23 [1, 2] : vector<1x2x1xf32> to vector<1xf32>
    %47 = vector.shape_cast %46 : vector<1xf32> to vector<1x1x1xf32>
    %48 = vector.extract %47[0, 0, 0] : f32 from vector<1x1x1xf32>
    %49 = vector.broadcast %48 : f32 to vector<1x1xf32>
    %50 = vector.shape_cast %42 : vector<2x1xf32> to vector<1x2x1xf32>
    %cst_24 = arith.constant dense<0.000000e+00> : vector<1xf32>
    %51 = vector.multi_reduction <add>, %50, %cst_24 [1, 2] : vector<1x2x1xf32> to vector<1xf32>
    %52 = vector.shape_cast %51 : vector<1xf32> to vector<1x1x1xf32>
    %53 = vector.extract %52[0, 0, 0] : f32 from vector<1x1x1xf32>
    %54 = vector.broadcast %53 : f32 to vector<1x1xf32>
    %c0_25 = arith.constant 0 : index
    %c0_26 = arith.constant 0 : index
    %55 = vector.load %arg6[%c0_25, %c0_26] : memref<2x1xi32, #tpu.memory_space<vmem>>, vector<2x1xi32>
    %c0_i32_27 = arith.constant 0 : i32
    %c16_i32_28 = arith.constant 16 : i32
    %56 = vector.broadcast %c0_i32_27 : i32 to vector<2x1xi32>
    %57 = arith.maxsi %56, %55 : vector<2x1xi32>
    %58 = vector.broadcast %c16_i32_28 : i32 to vector<2x1xi32>
    %59 = arith.minsi %58, %57 : vector<2x1xi32>
    %60 = vector.broadcast %59 : vector<2x1xi32> to vector<2x16xi32>
    %61 = arith.cmpi eq, %26, %60 : vector<2x16xi32>
    %62 = arith.extui %61 : vector<2x16xi1> to vector<2x16xi32>
    %63 = arith.sitofp %62 : vector<2x16xi32> to vector<2x16xf32>
    %64 = arith.mulf %63, %7 : vector<2x16xf32>
    %cst_29 = arith.constant dense<0.000000e+00> : vector<2xf32>
    %65 = vector.multi_reduction <add>, %64, %cst_29 [1] : vector<2x16xf32> to vector<2xf32>
    %66 = vector.shape_cast %65 : vector<2xf32> to vector<2x1xf32>
    %c16_i32_30 = arith.constant 16 : i32
    %67 = vector.broadcast %c16_i32_30 : i32 to vector<2x1xi32>
    %68 = arith.cmpi ne, %59, %67 : vector<2x1xi32>
    %69 = arith.extui %68 : vector<2x1xi1> to vector<2x1xi32>
    %70 = arith.sitofp %69 : vector<2x1xi32> to vector<2x1xf32>
    %71 = arith.subf %25, %66 : vector<2x1xf32>
    %72 = arith.mulf %71, %70 : vector<2x1xf32>
    %73 = vector.shape_cast %72 : vector<2x1xf32> to vector<1x2x1xf32>
    %cst_31 = arith.constant dense<0.000000e+00> : vector<1xf32>
    %74 = vector.multi_reduction <add>, %73, %cst_31 [1, 2] : vector<1x2x1xf32> to vector<1xf32>
    %75 = vector.shape_cast %74 : vector<1xf32> to vector<1x1x1xf32>
    %76 = vector.extract %75[0, 0, 0] : f32 from vector<1x1x1xf32>
    %77 = vector.broadcast %76 : f32 to vector<1x1xf32>
    %78 = vector.shape_cast %70 : vector<2x1xf32> to vector<1x2x1xf32>
    %cst_32 = arith.constant dense<0.000000e+00> : vector<1xf32>
    %79 = vector.multi_reduction <add>, %78, %cst_32 [1, 2] : vector<1x2x1xf32> to vector<1xf32>
    %80 = vector.shape_cast %79 : vector<1xf32> to vector<1x1x1xf32>
    %81 = vector.extract %80[0, 0, 0] : f32 from vector<1x1x1xf32>
    %82 = vector.broadcast %81 : f32 to vector<1x1xf32>
    %83 = arith.divf %49, %54 : vector<1x1xf32>
    %84 = arith.divf %77, %82 : vector<1x1xf32>
    %85 = arith.addf %83, %84 : vector<1x1xf32>
    %cst_33 = arith.constant 5.000000e-01 : f32
    %86 = vector.broadcast %cst_33 : f32 to vector<1x1xf32>
    %87 = arith.mulf %86, %85 : vector<1x1xf32>
    %c0_34 = arith.constant 0 : index
    %c0_35 = arith.constant 0 : index
    %88 = vector.load %arg9[%c0_34, %c0_35] : memref<1x1xf32, #tpu.memory_space<vmem>>, vector<1x1xf32>
    tpu.vector_store %arg9[%c0_34, %c0_35], %87 {strides = array<i32>} : memref<1x1xf32, #tpu.memory_space<vmem>>, vector<1x1xf32>,
    return
  }
}

module attributes {stable_mosaic.version = 11 : i64} {
  func.func @_encoder_kernel(%arg0: i32, %arg1: i32, %arg2: memref<1x16x128xf32, #tpu.memory_space<vmem>>, %arg3: memref<1x1x16xf32, #tpu.memory_space<vmem>>, %arg4: memref<1x128xf32, #tpu.memory_space<vmem>>, %arg5: memref<1x128xf32, #tpu.memory_space<vmem>>, %arg6: memref<1x128x384xbf16, #tpu.memory_space<vmem>>, %arg7: memref<1x1x384xf32, #tpu.memory_space<vmem>>, %arg8: memref<1x128x128xbf16, #tpu.memory_space<vmem>>, %arg9: memref<1x1x128xf32, #tpu.memory_space<vmem>>, %arg10: memref<1x1x128xf32, #tpu.memory_space<vmem>>, %arg11: memref<1x1x128xf32, #tpu.memory_space<vmem>>, %arg12: memref<1x128x256xbf16, #tpu.memory_space<vmem>>, %arg13: memref<1x1x256xf32, #tpu.memory_space<vmem>>, %arg14: memref<1x256x128xbf16, #tpu.memory_space<vmem>>, %arg15: memref<1x1x128xf32, #tpu.memory_space<vmem>>, %arg16: memref<1x1x128xf32, #tpu.memory_space<vmem>>, %arg17: memref<1x1x128xf32, #tpu.memory_space<vmem>>, %arg18: memref<1x16x128xf32, #tpu.memory_space<vmem>>, %arg19: memref<16x128xf32, #tpu.memory_space<vmem>>) attributes {dimension_semantics = [#tpu.dimension_semantics<parallel>, #tpu.dimension_semantics<arbitrary>], iteration_bounds = array<i64: 2, 2>, scalar_prefetch = 0 : i64, scratch_operands = 1 : i64, tpu.core_type = #tpu.core_type<tc>, window_params = [{transform_indices = @transform_0, window_bounds = array<i64: 1, 16, 128>}, {transform_indices = @transform_1, window_bounds = array<i64: 1, 1, 16>}, {pipeline_mode = #tpu.pipeline_mode<synchronous>, transform_indices = @transform_2, window_bounds = array<i64: 1, 128>}, {pipeline_mode = #tpu.pipeline_mode<synchronous>, transform_indices = @transform_3, window_bounds = array<i64: 1, 128>}, {transform_indices = @transform_4, window_bounds = array<i64: 1, 128, 384>}, {transform_indices = @transform_5, window_bounds = array<i64: 1, 1, 384>}, {transform_indices = @transform_6, window_bounds = array<i64: 1, 128, 128>}, {transform_indices = @transform_7, window_bounds = array<i64: 1, 1, 128>}, {transform_indices = @transform_8, window_bounds = array<i64: 1, 1, 128>}, {transform_indices = @transform_9, window_bounds = array<i64: 1, 1, 128>}, {transform_indices = @transform_10, window_bounds = array<i64: 1, 128, 256>}, {transform_indices = @transform_11, window_bounds = array<i64: 1, 1, 256>}, {transform_indices = @transform_12, window_bounds = array<i64: 1, 256, 128>}, {transform_indices = @transform_13, window_bounds = array<i64: 1, 1, 128>}, {transform_indices = @transform_14, window_bounds = array<i64: 1, 1, 128>}, {transform_indices = @transform_15, window_bounds = array<i64: 1, 1, 128>}, {transform_indices = @transform_16, window_bounds = array<i64: 1, 16, 128>}]} {
    %c0_i32 = arith.constant 0 : i32
    %0 = arith.cmpi eq, %arg1, %c0_i32 : i32
    %1 = arith.extui %0 : i1 to i32
    %c0_i32_0 = arith.constant 0 : i32
    %2 = arith.cmpi ne, %1, %c0_i32_0 : i32
    scf.if %2 {
      %c0_78 = arith.constant 0 : index
      %c0_79 = arith.constant 0 : index
      %c0_80 = arith.constant 0 : index
      %183 = vector.load %arg2[%c0_78, %c0_79, %c0_80] : memref<1x16x128xf32, #tpu.memory_space<vmem>>, vector<1x16x128xf32>
      %184 = vector.shape_cast %183 : vector<1x16x128xf32> to vector<16x128xf32>
      %c0_81 = arith.constant 0 : index
      %c0_82 = arith.constant 0 : index
      %185 = vector.load %arg4[%c0_81, %c0_82] : memref<1x128xf32, #tpu.memory_space<vmem>>, vector<1x128xf32>
      %c0_83 = arith.constant 0 : index
      %c0_84 = arith.constant 0 : index
      %186 = vector.load %arg5[%c0_83, %c0_84] : memref<1x128xf32, #tpu.memory_space<vmem>>, vector<1x128xf32>
      %cst_85 = arith.constant dense<0.000000e+00> : vector<16xf32>
      %187 = vector.multi_reduction <add>, %184, %cst_85 [1] : vector<16x128xf32> to vector<16xf32>
      %188 = vector.shape_cast %187 : vector<16xf32> to vector<16x1xf32>
      %cst_86 = arith.constant 1.280000e+02 : f32
      %189 = vector.broadcast %cst_86 : f32 to vector<16x1xf32>
      %190 = arith.divf %188, %189 : vector<16x1xf32>
      %191 = vector.broadcast %190 : vector<16x1xf32> to vector<16x128xf32>
      %192 = arith.subf %184, %191 : vector<16x128xf32>
      %193 = arith.mulf %192, %192 : vector<16x128xf32>
      %cst_87 = arith.constant dense<0.000000e+00> : vector<16xf32>
      %194 = vector.multi_reduction <add>, %193, %cst_87 [1] : vector<16x128xf32> to vector<16xf32>
      %195 = vector.shape_cast %194 : vector<16xf32> to vector<16x1xf32>
      %cst_88 = arith.constant 1.280000e+02 : f32
      %196 = vector.broadcast %cst_88 : f32 to vector<16x1xf32>
      %197 = arith.divf %195, %196 : vector<16x1xf32>
      %cst_89 = arith.constant 9.99999996E-13 : f32
      %198 = vector.broadcast %cst_89 : f32 to vector<16x1xf32>
      %199 = arith.addf %197, %198 : vector<16x1xf32>
      %200 = math.rsqrt %199 : vector<16x1xf32>
      %201 = vector.broadcast %190 : vector<16x1xf32> to vector<16x128xf32>
      %202 = arith.subf %184, %201 : vector<16x128xf32>
      %203 = vector.broadcast %200 : vector<16x1xf32> to vector<16x128xf32>
      %204 = arith.mulf %202, %203 : vector<16x128xf32>
      %205 = vector.broadcast %185 : vector<1x128xf32> to vector<16x128xf32>
      %206 = arith.mulf %204, %205 : vector<16x128xf32>
      %207 = vector.broadcast %186 : vector<1x128xf32> to vector<16x128xf32>
      %208 = arith.addf %206, %207 : vector<16x128xf32>
      %c0_90 = arith.constant 0 : index
      %c0_91 = arith.constant 0 : index
      %209 = vector.load %arg19[%c0_90, %c0_91] : memref<16x128xf32, #tpu.memory_space<vmem>>, vector<16x128xf32>
      tpu.vector_store %arg19[%c0_90, %c0_91], %208 {strides = array<i32>} : memref<16x128xf32, #tpu.memory_space<vmem>>, vector<16x128xf32>,
    } else {
    }
    %c0 = arith.constant 0 : index
    %c0_1 = arith.constant 0 : index
    %3 = vector.load %arg19[%c0, %c0_1] : memref<16x128xf32, #tpu.memory_space<vmem>>, vector<16x128xf32>
    %4 = arith.truncf %3 : vector<16x128xf32> to vector<16x128xbf16>
    %c0_2 = arith.constant 0 : index
    %c0_3 = arith.constant 0 : index
    %c0_4 = arith.constant 0 : index
    %5 = vector.load %arg6[%c0_2, %c0_3, %c0_4] : memref<1x128x384xbf16, #tpu.memory_space<vmem>>, vector<1x128x384xbf16>
    %6 = vector.shape_cast %5 : vector<1x128x384xbf16> to vector<128x384xbf16>
    %cst = arith.constant dense<0.000000e+00> : vector<16x384xf32>
    %7 = tpu.matmul %4, %6, %cst {dimension_numbers = #tpu.dot_dimension_numbers<[1], [0], [0], [1], [0, 0, 1, 1], [], []>} : vector<16x128xbf16>, vector<128x384xbf16>, vector<16x384xf32> -> vector<16x384xf32>
    %c0_5 = arith.constant 0 : index
    %c0_6 = arith.constant 0 : index
    %c0_7 = arith.constant 0 : index
    %8 = vector.load %arg7[%c0_5, %c0_6, %c0_7] : memref<1x1x384xf32, #tpu.memory_space<vmem>>, vector<1x1x384xf32>
    %9 = vector.shape_cast %8 : vector<1x1x384xf32> to vector<1x384xf32>
    %10 = vector.broadcast %9 : vector<1x384xf32> to vector<16x384xf32>
    %11 = arith.addf %7, %10 : vector<16x384xf32>
    %12 = vector.extract_strided_slice %11 {offsets = [0, 0], sizes = [16, 128], strides = [1, 1]} : vector<16x384xf32> to vector<16x128xf32>
    %cst_8 = arith.constant 0.176776692 : f32
    %13 = vector.broadcast %cst_8 : f32 to vector<16x128xf32>
    %14 = arith.mulf %12, %13 : vector<16x128xf32>
    %15 = vector.extract_strided_slice %11 {offsets = [0, 128], sizes = [16, 128], strides = [1, 1]} : vector<16x384xf32> to vector<16x128xf32>
    %16 = vector.extract_strided_slice %11 {offsets = [0, 256], sizes = [16, 128], strides = [1, 1]} : vector<16x384xf32> to vector<16x128xf32>
    %c0_9 = arith.constant 0 : index
    %c0_10 = arith.constant 0 : index
    %c0_11 = arith.constant 0 : index
    %17 = vector.load %arg3[%c0_9, %c0_10, %c0_11] : memref<1x1x16xf32, #tpu.memory_space<vmem>>, vector<1x1x16xf32>
    %18 = vector.shape_cast %17 : vector<1x1x16xf32> to vector<1x16xf32>
    %19 = vector.extract_strided_slice %14 {offsets = [0, 0], sizes = [16, 32], strides = [1, 1]} : vector<16x128xf32> to vector<16x32xf32>
    %20 = vector.extract_strided_slice %15 {offsets = [0, 0], sizes = [16, 32], strides = [1, 1]} : vector<16x128xf32> to vector<16x32xf32>
    %cst_12 = arith.constant dense<0.000000e+00> : vector<16x16xf32>
    %21 = tpu.matmul %19, %20, %cst_12 {dimension_numbers = #tpu.dot_dimension_numbers<[1], [1], [0], [0], [0, 0, 1, 0], [], []>} : vector<16x32xf32>, vector<16x32xf32>, vector<16x16xf32> -> vector<16x16xf32>
    %22 = vector.broadcast %18 : vector<1x16xf32> to vector<16x16xf32>
    %23 = arith.addf %21, %22 : vector<16x16xf32>
    %cst_13 = arith.constant dense<0xFF800000> : vector<16xf32>
    %24 = vector.multi_reduction <maximumf>, %23, %cst_13 [1] : vector<16x16xf32> to vector<16xf32>
    %25 = vector.shape_cast %24 : vector<16xf32> to vector<16x1xf32>
    %26 = vector.broadcast %25 : vector<16x1xf32> to vector<16x16xf32>
    %27 = arith.subf %23, %26 : vector<16x16xf32>
    %28 = math.exp %27 : vector<16x16xf32>
    %cst_14 = arith.constant dense<0.000000e+00> : vector<16xf32>
    %29 = vector.multi_reduction <add>, %28, %cst_14 [1] : vector<16x16xf32> to vector<16xf32>
    %30 = vector.shape_cast %29 : vector<16xf32> to vector<16x1xf32>
    %31 = tpu.reciprocal %30 {approx = true} : vector<16x1xf32> -> vector<16x1xf32>
    %32 = vector.broadcast %31 : vector<16x1xf32> to vector<16x16xf32>
    %33 = arith.mulf %28, %32 : vector<16x16xf32>
    %34 = vector.extract_strided_slice %16 {offsets = [0, 0], sizes = [16, 32], strides = [1, 1]} : vector<16x128xf32> to vector<16x32xf32>
    %cst_15 = arith.constant dense<0.000000e+00> : vector<16x32xf32>
    %35 = tpu.matmul %33, %34, %cst_15 {dimension_numbers = #tpu.dot_dimension_numbers<[1], [0], [0], [1], [0, 0, 1, 1], [], []>} : vector<16x16xf32>, vector<16x32xf32>, vector<16x32xf32> -> vector<16x32xf32>
    %36 = vector.extract_strided_slice %14 {offsets = [0, 32], sizes = [16, 32], strides = [1, 1]} : vector<16x128xf32> to vector<16x32xf32>
    %37 = vector.extract_strided_slice %15 {offsets = [0, 32], sizes = [16, 32], strides = [1, 1]} : vector<16x128xf32> to vector<16x32xf32>
    %cst_16 = arith.constant dense<0.000000e+00> : vector<16x16xf32>
    %38 = tpu.matmul %36, %37, %cst_16 {dimension_numbers = #tpu.dot_dimension_numbers<[1], [1], [0], [0], [0, 0, 1, 0], [], []>} : vector<16x32xf32>, vector<16x32xf32>, vector<16x16xf32> -> vector<16x16xf32>
    %39 = vector.broadcast %18 : vector<1x16xf32> to vector<16x16xf32>
    %40 = arith.addf %38, %39 : vector<16x16xf32>
    %cst_17 = arith.constant dense<0xFF800000> : vector<16xf32>
    %41 = vector.multi_reduction <maximumf>, %40, %cst_17 [1] : vector<16x16xf32> to vector<16xf32>
    %42 = vector.shape_cast %41 : vector<16xf32> to vector<16x1xf32>
    %43 = vector.broadcast %42 : vector<16x1xf32> to vector<16x16xf32>
    %44 = arith.subf %40, %43 : vector<16x16xf32>
    %45 = math.exp %44 : vector<16x16xf32>
    %cst_18 = arith.constant dense<0.000000e+00> : vector<16xf32>
    %46 = vector.multi_reduction <add>, %45, %cst_18 [1] : vector<16x16xf32> to vector<16xf32>
    %47 = vector.shape_cast %46 : vector<16xf32> to vector<16x1xf32>
    %48 = tpu.reciprocal %47 {approx = true} : vector<16x1xf32> -> vector<16x1xf32>
    %49 = vector.broadcast %48 : vector<16x1xf32> to vector<16x16xf32>
    %50 = arith.mulf %45, %49 : vector<16x16xf32>
    %51 = vector.extract_strided_slice %16 {offsets = [0, 32], sizes = [16, 32], strides = [1, 1]} : vector<16x128xf32> to vector<16x32xf32>
    %cst_19 = arith.constant dense<0.000000e+00> : vector<16x32xf32>
    %52 = tpu.matmul %50, %51, %cst_19 {dimension_numbers = #tpu.dot_dimension_numbers<[1], [0], [0], [1], [0, 0, 1, 1], [], []>} : vector<16x16xf32>, vector<16x32xf32>, vector<16x32xf32> -> vector<16x32xf32>
    %53 = vector.extract_strided_slice %14 {offsets = [0, 64], sizes = [16, 32], strides = [1, 1]} : vector<16x128xf32> to vector<16x32xf32>
    %54 = vector.extract_strided_slice %15 {offsets = [0, 64], sizes = [16, 32], strides = [1, 1]} : vector<16x128xf32> to vector<16x32xf32>
    %cst_20 = arith.constant dense<0.000000e+00> : vector<16x16xf32>
    %55 = tpu.matmul %53, %54, %cst_20 {dimension_numbers = #tpu.dot_dimension_numbers<[1], [1], [0], [0], [0, 0, 1, 0], [], []>} : vector<16x32xf32>, vector<16x32xf32>, vector<16x16xf32> -> vector<16x16xf32>
    %56 = vector.broadcast %18 : vector<1x16xf32> to vector<16x16xf32>
    %57 = arith.addf %55, %56 : vector<16x16xf32>
    %cst_21 = arith.constant dense<0xFF800000> : vector<16xf32>
    %58 = vector.multi_reduction <maximumf>, %57, %cst_21 [1] : vector<16x16xf32> to vector<16xf32>
    %59 = vector.shape_cast %58 : vector<16xf32> to vector<16x1xf32>
    %60 = vector.broadcast %59 : vector<16x1xf32> to vector<16x16xf32>
    %61 = arith.subf %57, %60 : vector<16x16xf32>
    %62 = math.exp %61 : vector<16x16xf32>
    %cst_22 = arith.constant dense<0.000000e+00> : vector<16xf32>
    %63 = vector.multi_reduction <add>, %62, %cst_22 [1] : vector<16x16xf32> to vector<16xf32>
    %64 = vector.shape_cast %63 : vector<16xf32> to vector<16x1xf32>
    %65 = tpu.reciprocal %64 {approx = true} : vector<16x1xf32> -> vector<16x1xf32>
    %66 = vector.broadcast %65 : vector<16x1xf32> to vector<16x16xf32>
    %67 = arith.mulf %62, %66 : vector<16x16xf32>
    %68 = vector.extract_strided_slice %16 {offsets = [0, 64], sizes = [16, 32], strides = [1, 1]} : vector<16x128xf32> to vector<16x32xf32>
    %cst_23 = arith.constant dense<0.000000e+00> : vector<16x32xf32>
    %69 = tpu.matmul %67, %68, %cst_23 {dimension_numbers = #tpu.dot_dimension_numbers<[1], [0], [0], [1], [0, 0, 1, 1], [], []>} : vector<16x16xf32>, vector<16x32xf32>, vector<16x32xf32> -> vector<16x32xf32>
    %70 = vector.extract_strided_slice %14 {offsets = [0, 96], sizes = [16, 32], strides = [1, 1]} : vector<16x128xf32> to vector<16x32xf32>
    %71 = vector.extract_strided_slice %15 {offsets = [0, 96], sizes = [16, 32], strides = [1, 1]} : vector<16x128xf32> to vector<16x32xf32>
    %cst_24 = arith.constant dense<0.000000e+00> : vector<16x16xf32>
    %72 = tpu.matmul %70, %71, %cst_24 {dimension_numbers = #tpu.dot_dimension_numbers<[1], [1], [0], [0], [0, 0, 1, 0], [], []>} : vector<16x32xf32>, vector<16x32xf32>, vector<16x16xf32> -> vector<16x16xf32>
    %73 = vector.broadcast %18 : vector<1x16xf32> to vector<16x16xf32>
    %74 = arith.addf %72, %73 : vector<16x16xf32>
    %cst_25 = arith.constant dense<0xFF800000> : vector<16xf32>
    %75 = vector.multi_reduction <maximumf>, %74, %cst_25 [1] : vector<16x16xf32> to vector<16xf32>
    %76 = vector.shape_cast %75 : vector<16xf32> to vector<16x1xf32>
    %77 = vector.broadcast %76 : vector<16x1xf32> to vector<16x16xf32>
    %78 = arith.subf %74, %77 : vector<16x16xf32>
    %79 = math.exp %78 : vector<16x16xf32>
    %cst_26 = arith.constant dense<0.000000e+00> : vector<16xf32>
    %80 = vector.multi_reduction <add>, %79, %cst_26 [1] : vector<16x16xf32> to vector<16xf32>
    %81 = vector.shape_cast %80 : vector<16xf32> to vector<16x1xf32>
    %82 = tpu.reciprocal %81 {approx = true} : vector<16x1xf32> -> vector<16x1xf32>
    %83 = vector.broadcast %82 : vector<16x1xf32> to vector<16x16xf32>
    %84 = arith.mulf %79, %83 : vector<16x16xf32>
    %85 = vector.extract_strided_slice %16 {offsets = [0, 96], sizes = [16, 32], strides = [1, 1]} : vector<16x128xf32> to vector<16x32xf32>
    %cst_27 = arith.constant dense<0.000000e+00> : vector<16x32xf32>
    %86 = tpu.matmul %84, %85, %cst_27 {dimension_numbers = #tpu.dot_dimension_numbers<[1], [0], [0], [1], [0, 0, 1, 1], [], []>} : vector<16x16xf32>, vector<16x32xf32>, vector<16x32xf32> -> vector<16x32xf32>
    %87 = tpu.concatenate %35, %52, %69, %86 in 1 : vector<16x32xf32>, vector<16x32xf32>, vector<16x32xf32>, vector<16x32xf32> -> vector<16x128xf32>
    %88 = arith.truncf %87 : vector<16x128xf32> to vector<16x128xbf16>
    %c0_28 = arith.constant 0 : index
    %c0_29 = arith.constant 0 : index
    %c0_30 = arith.constant 0 : index
    %89 = vector.load %arg8[%c0_28, %c0_29, %c0_30] : memref<1x128x128xbf16, #tpu.memory_space<vmem>>, vector<1x128x128xbf16>
    %90 = vector.shape_cast %89 : vector<1x128x128xbf16> to vector<128x128xbf16>
    %cst_31 = arith.constant dense<0.000000e+00> : vector<16x128xf32>
    %91 = tpu.matmul %88, %90, %cst_31 {dimension_numbers = #tpu.dot_dimension_numbers<[1], [0], [0], [1], [0, 0, 1, 1], [], []>} : vector<16x128xbf16>, vector<128x128xbf16>, vector<16x128xf32> -> vector<16x128xf32>
    %c0_32 = arith.constant 0 : index
    %c0_33 = arith.constant 0 : index
    %c0_34 = arith.constant 0 : index
    %92 = vector.load %arg9[%c0_32, %c0_33, %c0_34] : memref<1x1x128xf32, #tpu.memory_space<vmem>>, vector<1x1x128xf32>
    %93 = vector.shape_cast %92 : vector<1x1x128xf32> to vector<1x128xf32>
    %94 = vector.broadcast %93 : vector<1x128xf32> to vector<16x128xf32>
    %95 = arith.addf %91, %94 : vector<16x128xf32>
    %96 = arith.addf %95, %3 : vector<16x128xf32>
    %c0_35 = arith.constant 0 : index
    %c0_36 = arith.constant 0 : index
    %c0_37 = arith.constant 0 : index
    %97 = vector.load %arg10[%c0_35, %c0_36, %c0_37] : memref<1x1x128xf32, #tpu.memory_space<vmem>>, vector<1x1x128xf32>
    %98 = vector.shape_cast %97 : vector<1x1x128xf32> to vector<1x128xf32>
    %c0_38 = arith.constant 0 : index
    %c0_39 = arith.constant 0 : index
    %c0_40 = arith.constant 0 : index
    %99 = vector.load %arg11[%c0_38, %c0_39, %c0_40] : memref<1x1x128xf32, #tpu.memory_space<vmem>>, vector<1x1x128xf32>
    %100 = vector.shape_cast %99 : vector<1x1x128xf32> to vector<1x128xf32>
    %cst_41 = arith.constant dense<0.000000e+00> : vector<16xf32>
    %101 = vector.multi_reduction <add>, %96, %cst_41 [1] : vector<16x128xf32> to vector<16xf32>
    %102 = vector.shape_cast %101 : vector<16xf32> to vector<16x1xf32>
    %cst_42 = arith.constant 1.280000e+02 : f32
    %103 = vector.broadcast %cst_42 : f32 to vector<16x1xf32>
    %104 = arith.divf %102, %103 : vector<16x1xf32>
    %105 = vector.broadcast %104 : vector<16x1xf32> to vector<16x128xf32>
    %106 = arith.subf %96, %105 : vector<16x128xf32>
    %107 = arith.mulf %106, %106 : vector<16x128xf32>
    %cst_43 = arith.constant dense<0.000000e+00> : vector<16xf32>
    %108 = vector.multi_reduction <add>, %107, %cst_43 [1] : vector<16x128xf32> to vector<16xf32>
    %109 = vector.shape_cast %108 : vector<16xf32> to vector<16x1xf32>
    %cst_44 = arith.constant 1.280000e+02 : f32
    %110 = vector.broadcast %cst_44 : f32 to vector<16x1xf32>
    %111 = arith.divf %109, %110 : vector<16x1xf32>
    %cst_45 = arith.constant 9.99999996E-13 : f32
    %112 = vector.broadcast %cst_45 : f32 to vector<16x1xf32>
    %113 = arith.addf %111, %112 : vector<16x1xf32>
    %114 = math.rsqrt %113 : vector<16x1xf32>
    %115 = vector.broadcast %104 : vector<16x1xf32> to vector<16x128xf32>
    %116 = arith.subf %96, %115 : vector<16x128xf32>
    %117 = vector.broadcast %114 : vector<16x1xf32> to vector<16x128xf32>
    %118 = arith.mulf %116, %117 : vector<16x128xf32>
    %119 = vector.broadcast %98 : vector<1x128xf32> to vector<16x128xf32>
    %120 = arith.mulf %118, %119 : vector<16x128xf32>
    %121 = vector.broadcast %100 : vector<1x128xf32> to vector<16x128xf32>
    %122 = arith.addf %120, %121 : vector<16x128xf32>
    %123 = arith.truncf %122 : vector<16x128xf32> to vector<16x128xbf16>
    %c0_46 = arith.constant 0 : index
    %c0_47 = arith.constant 0 : index
    %c0_48 = arith.constant 0 : index
    %124 = vector.load %arg12[%c0_46, %c0_47, %c0_48] : memref<1x128x256xbf16, #tpu.memory_space<vmem>>, vector<1x128x256xbf16>
    %125 = vector.shape_cast %124 : vector<1x128x256xbf16> to vector<128x256xbf16>
    %cst_49 = arith.constant dense<0.000000e+00> : vector<16x256xf32>
    %126 = tpu.matmul %123, %125, %cst_49 {dimension_numbers = #tpu.dot_dimension_numbers<[1], [0], [0], [1], [0, 0, 1, 1], [], []>} : vector<16x128xbf16>, vector<128x256xbf16>, vector<16x256xf32> -> vector<16x256xf32>
    %c0_50 = arith.constant 0 : index
    %c0_51 = arith.constant 0 : index
    %c0_52 = arith.constant 0 : index
    %127 = vector.load %arg13[%c0_50, %c0_51, %c0_52] : memref<1x1x256xf32, #tpu.memory_space<vmem>>, vector<1x1x256xf32>
    %128 = vector.shape_cast %127 : vector<1x1x256xf32> to vector<1x256xf32>
    %129 = vector.broadcast %128 : vector<1x256xf32> to vector<16x256xf32>
    %130 = arith.addf %126, %129 : vector<16x256xf32>
    %131 = arith.mulf %130, %130 : vector<16x256xf32>
    %132 = arith.mulf %130, %131 : vector<16x256xf32>
    %cst_53 = arith.constant 4.471500e-02 : f32
    %133 = vector.broadcast %cst_53 : f32 to vector<16x256xf32>
    %134 = arith.mulf %133, %132 : vector<16x256xf32>
    %135 = arith.addf %130, %134 : vector<16x256xf32>
    %cst_54 = arith.constant 0.797884583 : f32
    %136 = vector.broadcast %cst_54 : f32 to vector<16x256xf32>
    %137 = arith.mulf %136, %135 : vector<16x256xf32>
    %138 = math.tanh %137 : vector<16x256xf32>
    %cst_55 = arith.constant 1.000000e+00 : f32
    %139 = vector.broadcast %cst_55 : f32 to vector<16x256xf32>
    %140 = arith.addf %139, %138 : vector<16x256xf32>
    %cst_56 = arith.constant 5.000000e-01 : f32
    %141 = vector.broadcast %cst_56 : f32 to vector<16x256xf32>
    %142 = arith.mulf %141, %140 : vector<16x256xf32>
    %143 = arith.mulf %130, %142 : vector<16x256xf32>
    %144 = arith.truncf %143 : vector<16x256xf32> to vector<16x256xbf16>
    %c0_57 = arith.constant 0 : index
    %c0_58 = arith.constant 0 : index
    %c0_59 = arith.constant 0 : index
    %145 = vector.load %arg14[%c0_57, %c0_58, %c0_59] : memref<1x256x128xbf16, #tpu.memory_space<vmem>>, vector<1x256x128xbf16>
    %146 = vector.shape_cast %145 : vector<1x256x128xbf16> to vector<256x128xbf16>
    %cst_60 = arith.constant dense<0.000000e+00> : vector<16x128xf32>
    %147 = tpu.matmul %144, %146, %cst_60 {dimension_numbers = #tpu.dot_dimension_numbers<[1], [0], [0], [1], [0, 0, 1, 1], [], []>} : vector<16x256xbf16>, vector<256x128xbf16>, vector<16x128xf32> -> vector<16x128xf32>
    %c0_61 = arith.constant 0 : index
    %c0_62 = arith.constant 0 : index
    %c0_63 = arith.constant 0 : index
    %148 = vector.load %arg15[%c0_61, %c0_62, %c0_63] : memref<1x1x128xf32, #tpu.memory_space<vmem>>, vector<1x1x128xf32>
    %149 = vector.shape_cast %148 : vector<1x1x128xf32> to vector<1x128xf32>
    %150 = vector.broadcast %149 : vector<1x128xf32> to vector<16x128xf32>
    %151 = arith.addf %147, %150 : vector<16x128xf32>
    %152 = arith.addf %151, %122 : vector<16x128xf32>
    %c0_64 = arith.constant 0 : index
    %c0_65 = arith.constant 0 : index
    %c0_66 = arith.constant 0 : index
    %153 = vector.load %arg16[%c0_64, %c0_65, %c0_66] : memref<1x1x128xf32, #tpu.memory_space<vmem>>, vector<1x1x128xf32>
    %154 = vector.shape_cast %153 : vector<1x1x128xf32> to vector<1x128xf32>
    %c0_67 = arith.constant 0 : index
    %c0_68 = arith.constant 0 : index
    %c0_69 = arith.constant 0 : index
    %155 = vector.load %arg17[%c0_67, %c0_68, %c0_69] : memref<1x1x128xf32, #tpu.memory_space<vmem>>, vector<1x1x128xf32>
    %156 = vector.shape_cast %155 : vector<1x1x128xf32> to vector<1x128xf32>
    %cst_70 = arith.constant dense<0.000000e+00> : vector<16xf32>
    %157 = vector.multi_reduction <add>, %152, %cst_70 [1] : vector<16x128xf32> to vector<16xf32>
    %158 = vector.shape_cast %157 : vector<16xf32> to vector<16x1xf32>
    %cst_71 = arith.constant 1.280000e+02 : f32
    %159 = vector.broadcast %cst_71 : f32 to vector<16x1xf32>
    %160 = arith.divf %158, %159 : vector<16x1xf32>
    %161 = vector.broadcast %160 : vector<16x1xf32> to vector<16x128xf32>
    %162 = arith.subf %152, %161 : vector<16x128xf32>
    %163 = arith.mulf %162, %162 : vector<16x128xf32>
    %cst_72 = arith.constant dense<0.000000e+00> : vector<16xf32>
    %164 = vector.multi_reduction <add>, %163, %cst_72 [1] : vector<16x128xf32> to vector<16xf32>
    %165 = vector.shape_cast %164 : vector<16xf32> to vector<16x1xf32>
    %cst_73 = arith.constant 1.280000e+02 : f32
    %166 = vector.broadcast %cst_73 : f32 to vector<16x1xf32>
    %167 = arith.divf %165, %166 : vector<16x1xf32>
    %cst_74 = arith.constant 9.99999996E-13 : f32
    %168 = vector.broadcast %cst_74 : f32 to vector<16x1xf32>
    %169 = arith.addf %167, %168 : vector<16x1xf32>
    %170 = math.rsqrt %169 : vector<16x1xf32>
    %171 = vector.broadcast %160 : vector<16x1xf32> to vector<16x128xf32>
    %172 = arith.subf %152, %171 : vector<16x128xf32>
    %173 = vector.broadcast %170 : vector<16x1xf32> to vector<16x128xf32>
    %174 = arith.mulf %172, %173 : vector<16x128xf32>
    %175 = vector.broadcast %154 : vector<1x128xf32> to vector<16x128xf32>
    %176 = arith.mulf %174, %175 : vector<16x128xf32>
    %177 = vector.broadcast %156 : vector<1x128xf32> to vector<16x128xf32>
    %178 = arith.addf %176, %177 : vector<16x128xf32>
    %c0_75 = arith.constant 0 : index
    %c0_76 = arith.constant 0 : index
    %179 = vector.load %arg19[%c0_75, %c0_76] : memref<16x128xf32, #tpu.memory_space<vmem>>, vector<16x128xf32>
    tpu.vector_store %arg19[%c0_75, %c0_76], %178 {strides = array<i32>} : memref<16x128xf32, #tpu.memory_space<vmem>>, vector<16x128xf32>,
    %c1_i32 = arith.constant 1 : i32
    %180 = arith.cmpi eq, %arg1, %c1_i32 : i32
    %181 = arith.extui %180 : i1 to i32
    %c0_i32_77 = arith.constant 0 : i32
    %182 = arith.cmpi ne, %181, %c0_i32_77 : i32
    scf.if %182 {
      %c0_78 = arith.constant 0 : index
      %c0_79 = arith.constant 0 : index
      %c0_80 = arith.constant 0 : index
      %183 = vector.load %arg18[%c0_78, %c0_79, %c0_80] : memref<1x16x128xf32, #tpu.memory_space<vmem>>, vector<1x16x128xf32>
      %184 = vector.shape_cast %183 : vector<1x16x128xf32> to vector<16x128xf32>
      %185 = vector.shape_cast %178 : vector<16x128xf32> to vector<1x16x128xf32>
      tpu.vector_store %arg18[%c0_78, %c0_79, %c0_80], %185 {strides = array<i32>} : memref<1x16x128xf32, #tpu.memory_space<vmem>>, vector<1x16x128xf32>,
    } else {
    }
    return
  }
  func.func @transform_0(%arg0: i32, %arg1: i32) -> (i32, i32, i32) {
    %c0_i32 = arith.constant 0 : i32
    %c0_i32_0 = arith.constant 0 : i32
    %c0_i32_1 = arith.constant 0 : i32
    return %arg0, %c0_i32, %c0_i32_0 : i32, i32, i32
  }
  func.func @transform_1(%arg0: i32, %arg1: i32) -> (i32, i32, i32) {
    %c0_i32 = arith.constant 0 : i32
    %c0_i32_0 = arith.constant 0 : i32
    %c0_i32_1 = arith.constant 0 : i32
    return %arg0, %c0_i32, %c0_i32_0 : i32, i32, i32
  }
  func.func @transform_2(%arg0: i32, %arg1: i32) -> (i32, i32) {
    %c0_i32 = arith.constant 0 : i32
    %c0_i32_0 = arith.constant 0 : i32
    %c0_i32_1 = arith.constant 0 : i32
    return %c0_i32, %c0_i32_0 : i32, i32
  }
  func.func @transform_3(%arg0: i32, %arg1: i32) -> (i32, i32) {
    %c0_i32 = arith.constant 0 : i32
    %c0_i32_0 = arith.constant 0 : i32
    %c0_i32_1 = arith.constant 0 : i32
    return %c0_i32, %c0_i32_0 : i32, i32
  }
  func.func @transform_4(%arg0: i32, %arg1: i32) -> (i32, i32, i32) {
    %c0_i32 = arith.constant 0 : i32
    %c0_i32_0 = arith.constant 0 : i32
    %c0_i32_1 = arith.constant 0 : i32
    return %arg1, %c0_i32, %c0_i32_0 : i32, i32, i32
  }
  func.func @transform_5(%arg0: i32, %arg1: i32) -> (i32, i32, i32) {
    %c0_i32 = arith.constant 0 : i32
    %c0_i32_0 = arith.constant 0 : i32
    %c0_i32_1 = arith.constant 0 : i32
    return %arg1, %c0_i32, %c0_i32_0 : i32, i32, i32
  }
  func.func @transform_6(%arg0: i32, %arg1: i32) -> (i32, i32, i32) {
    %c0_i32 = arith.constant 0 : i32
    %c0_i32_0 = arith.constant 0 : i32
    %c0_i32_1 = arith.constant 0 : i32
    return %arg1, %c0_i32, %c0_i32_0 : i32, i32, i32
  }
  func.func @transform_7(%arg0: i32, %arg1: i32) -> (i32, i32, i32) {
    %c0_i32 = arith.constant 0 : i32
    %c0_i32_0 = arith.constant 0 : i32
    %c0_i32_1 = arith.constant 0 : i32
    return %arg1, %c0_i32, %c0_i32_0 : i32, i32, i32
  }
  func.func @transform_8(%arg0: i32, %arg1: i32) -> (i32, i32, i32) {
    %c0_i32 = arith.constant 0 : i32
    %c0_i32_0 = arith.constant 0 : i32
    %c0_i32_1 = arith.constant 0 : i32
    return %arg1, %c0_i32, %c0_i32_0 : i32, i32, i32
  }
  func.func @transform_9(%arg0: i32, %arg1: i32) -> (i32, i32, i32) {
    %c0_i32 = arith.constant 0 : i32
    %c0_i32_0 = arith.constant 0 : i32
    %c0_i32_1 = arith.constant 0 : i32
    return %arg1, %c0_i32, %c0_i32_0 : i32, i32, i32
  }
  func.func @transform_10(%arg0: i32, %arg1: i32) -> (i32, i32, i32) {
    %c0_i32 = arith.constant 0 : i32
    %c0_i32_0 = arith.constant 0 : i32
    %c0_i32_1 = arith.constant 0 : i32
    return %arg1, %c0_i32, %c0_i32_0 : i32, i32, i32
  }
  func.func @transform_11(%arg0: i32, %arg1: i32) -> (i32, i32, i32) {
    %c0_i32 = arith.constant 0 : i32
    %c0_i32_0 = arith.constant 0 : i32
    %c0_i32_1 = arith.constant 0 : i32
    return %arg1, %c0_i32, %c0_i32_0 : i32, i32, i32
  }
  func.func @transform_12(%arg0: i32, %arg1: i32) -> (i32, i32, i32) {
    %c0_i32 = arith.constant 0 : i32
    %c0_i32_0 = arith.constant 0 : i32
    %c0_i32_1 = arith.constant 0 : i32
    return %arg1, %c0_i32, %c0_i32_0 : i32, i32, i32
  }
  func.func @transform_13(%arg0: i32, %arg1: i32) -> (i32, i32, i32) {
    %c0_i32 = arith.constant 0 : i32
    %c0_i32_0 = arith.constant 0 : i32
    %c0_i32_1 = arith.constant 0 : i32
    return %arg1, %c0_i32, %c0_i32_0 : i32, i32, i32
  }
  func.func @transform_14(%arg0: i32, %arg1: i32) -> (i32, i32, i32) {
    %c0_i32 = arith.constant 0 : i32
    %c0_i32_0 = arith.constant 0 : i32
    %c0_i32_1 = arith.constant 0 : i32
    return %arg1, %c0_i32, %c0_i32_0 : i32, i32, i32
  }
  func.func @transform_15(%arg0: i32, %arg1: i32) -> (i32, i32, i32) {
    %c0_i32 = arith.constant 0 : i32
    %c0_i32_0 = arith.constant 0 : i32
    %c0_i32_1 = arith.constant 0 : i32
    return %arg1, %c0_i32, %c0_i32_0 : i32, i32, i32
  }
  func.func @transform_16(%arg0: i32, %arg1: i32) -> (i32, i32, i32) {
    %c0_i32 = arith.constant 0 : i32
    %c0_i32_0 = arith.constant 0 : i32
    %c0_i32_1 = arith.constant 0 : i32
    return %arg0, %c0_i32, %c0_i32_0 : i32, i32, i32
  }
}

</mosaic_0001>

<bundles_post_ra>
// kernel: squad_forward.3
= control target key start
LH: loop header
LB: loop body
LE: loop exit
PB: predicated region body
PF: predicated region fallthrough
CT: control target
= control target key end

     0   :  { %s659_s0 = inlined_call_operand.vmem [shape: f32[2,16,128], index: 0, kind: input, shape index: {}]   ;;  %s660_s1 = inlined_call_operand.vmem [shape: f32[1,1,128], index: 1, kind: input, shape index: {}]   ;;  %s661_s2 = inlined_call_operand.vmem [shape: f32[1,1,128], index: 2, kind: input, shape index: {}]   ;;  %s662_s3 = inlined_call_operand.<no memory space> [shape: f32[1,1], index: 3, kind: input, shape index: {}]   ;;  %s663_s5 = inlined_call_operand.vmem [shape: s32[2,1], index: 5, kind: input, shape index: {}]   ;;  %s664_s6 = inlined_call_operand.vmem [shape: s32[2,1], index: 6, kind: input, shape index: {}]   ;;  %s665_s7 = inlined_call_operand.hbm [shape: f32[2,16], index: 7, kind: output, shape index: {0}]   ;;  %s666_s8 = inlined_call_operand.hbm [shape: f32[2,16], index: 8, kind: output, shape index: {1}]   ;;  %s667_s9 = inlined_call_operand.hbm [shape: f32[1,1], index: 9, kind: output, shape index: {2}]   ;;  %s668_s4 = inlined_call_operand.<no memory space> [shape: f32[1,1], index: 4, kind: input, shape index: {}]  }
   0x1   :  { %v15_v0 = vstv %s662_s3  ;;  %v17_v1 = vstv %s668_s4 }
   0x2   :  { %16 = vst [vmem:[#allocation2] sm:$0x1] %v15_v0  ;;  %18 = vst [vmem:[#allocation3] sm:$0x1] %v17_v1 }
   0x3   :  { %19 = vsyncpa [#allocation5], 0  ;;  %v534_v2 = vld [vmem:[%s659_s0] sm:$0xff]  ;;  %v542_v4 = vld [vmem:[%s659_s0 + $0x8] sm:$0xff]  ;;  %v470_v8 = vmov 0  }
   0x4   :  { %v363_v3 = vld [vmem:[%s660_s1] ss:$0 sm:$0xff]  ;;  %v548_v6 = vld [vmem:[%s659_s0 + $0x10] sm:$0xff]  ;;  %v553_v7 = vld [vmem:[%s659_s0 + $0x18] sm:$0xff]  ;;  %384 = vset.pattern.permute.xlu0 %v470_v8  ;;  %385 = vset.pattern.permute.xlu1 %v470_v8 }
   0x5   :  { %v46_v5 = vmul.f32 %v363_v3, %v534_v2  ;;  %v48_v9 = vmul.f32 %v363_v3, %v548_v6 }
   0x6   :  { %20 = vsyncpa [#allocation7], 0  ;;  %v47_v10 = vmul.f32 %v363_v3, %v542_v4  ;;  %v49_v11 = vmul.f32 %v363_v3, %v553_v7  ;;  %v109_v13 = vlaneseq  ;;  %vm120_vm0 = vcmask 130112   ;;  %v229_v50 = vld [vmem:[%s663_s5] sm:$0x3] }
   0x7   :  { %50 = vadd.xlane.f32.xlu0 %v46_v5  ;;  %54 = vadd.xlane.f32.xlu1 %v48_v9  ;;  %vm131_vm1 = vcmask 1041409   ;;  %vm134_vm2 = vcmask 123904   ;;  %vm230_vm3 = vcmp.gt.s32.totalorder %v229_v50, 0  ;;  %v272_v52 = vld [vmem:[%s664_s6] sm:$0x3]  ;;  %vm249_vm10 = vcmask 1024  }
   0x8   :  { %v558_v15 = vand.u32 127, %v109_v13  ;;  %v112_v17 = vshrl.u32 %v109_v13, 7  ;;  %v231_v54 = vsel %vm230_vm3, %v229_v50, 0  ;;  %vm273_vm4 = vcmp.gt.s32.totalorder %v272_v52, 0 }
   0x9   :  { %v364_v12 = vld [vmem:[#allocation2] ss:$0 sm:$0xff]  ;;  %vm232_vm5 = vcmp.lt.s32.totalorder %v231_v54, 16  ;;  %v274_v56 = vsel %vm273_vm4, %v272_v52, 0 }
   0xa   :  { %v115_v18 = vadd.s32 4294967288, %v558_v15  ;;  %v562_v21 = vsub.s32 %v558_v15, %v112_v17  ;;  %v167_v36 = vsub.s32 0, %v112_v17  ;;  %v171_v37 = vsub.s32 1, %v112_v17 }
   0xb   :  { %52 = vadd.xlane.f32.xlu0 %v47_v10  ;;  %56 = vadd.xlane.f32.xlu1 %v49_v11  ;;  %v233_v57 = vsel %vm232_vm5, %v231_v54, 16  ;;  %vm275_vm6 = vcmp.lt.s32.totalorder %v274_v56, 16 }
   0xc   :  { %v564_v22 = vsub.s32 %v115_v18, %v112_v17  ;;  %v276_v58 = vsel %vm275_vm6, %v274_v56, 16  ;;  %vm244_vm9 = vcmp.ne.s32.totalorder %v233_v57, 16 }
   0xd   :  { %vm287_vm11 = vcmp.ne.s32.totalorder %v276_v58, 16 }
  0x21   :  { %65 = vperm.xlu0 %384, %v364_v12   ;;  %v471_v12 = vmov 0.0  }
  0x94   :  { %v51_v14 = vpop.xlane.xlu0 %50  ;;  %v55_v16 = vpop.xlane.xlu1 %54 }
  0x98   :  { %v53_v19 = vpop.xlane.xlu0 %52  ;;  %v57_v20 = vpop.xlane.xlu1 %56 }
  0xa0   :  { %v66_v23 = vpop.permute.xlu0 %65 }
  0xa1   :  { %v68_v24 = vadd.f32 %v66_v23, %v51_v14  ;;  %v69_v25 = vadd.f32 %v66_v23, %v53_v19  ;;  %v70_v26 = vadd.f32 %v66_v23, %v55_v16  ;;  %v71_v27 = vadd.f32 %v66_v23, %v57_v20 }
  0xa2   :  { %v368_v23 = vsel %vm244_vm9, 1.0, %v471_v12 }
  0xa3   :  { %v114_v28 = vrot.slane %v68_v24, %v562_v21  ;;  %v119_v29 = vrot.slane %v69_v25, %v564_v22  ;;  %v125_v30 = vrot.slane %v70_v26, %v562_v21  ;;  %v129_v31 = vrot.slane %v71_v27, %v564_v22 }
  0xa5   :  { %v121_v32 = vsel %vm120_vm0, %v119_v29, %v114_v28  ;;  %v130_v33 = vsel %vm120_vm0, %v129_v31, %v125_v30 }
  0xa6   :  { %v573_v34 = vsel %vm131_vm1, %v130_v33, %v121_v32 }
  0xa7   :  { %v161_v35 = vsel %vm134_vm2, %v573_v34, -inf  ;;  %135 = vst.msk [vmem:[#allocation4] sm:$0x3] %vm134_vm2, %v573_v34 }
  0xa8   :  { %162 = vmax.xlane.f32.xlu1 %v161_v35 }
 0x135   :  { %v579_v38 = vpop.xlane.xlu1 %162 }
 0x136   :  { %v168_v39 = vrot.slane %v579_v38, %v167_v36  ;;  %v172_v40 = vrot.slane %v579_v38, %v171_v37 }
 0x138   :  { %v175_v41 = vsub.f32 %v68_v24, %v168_v39  ;;  %v176_v42 = vsub.f32 %v69_v25, %v168_v39  ;;  %v177_v44 = vsub.f32 %v70_v26, %v172_v40  ;;  %v178_v46 = vsub.f32 %v71_v27, %v172_v40 }
 0x139   :  { %v261_v24 = vsel %vm249_vm10, %v368_v23, 0.0  ;;  %v370_v25 = vsel %vm287_vm11, 1.0, %v471_v12 }
 0x13a   :  { %v179_v43 = vmul.f32 1.442695, %v175_v41  ;;  %v181_v45 = vmul.f32 1.442695, %v176_v42  ;;  %v183_v47 = vmul.f32 1.442695, %v177_v44 }
 0x13b   :  { %v185_v48 = vmul.f32 1.442695, %v178_v46  ;;  %v303_v26 = vsel %vm249_vm10, %v370_v25, 0.0  ;;  %v366_v42 = vld [vmem:[#allocation3] ss:$0 sm:$0xff] }
 0x13c   :  { %386 = vpow2.f32 %v179_v43 }
 0x13d   :  { %388 = vpow2.f32 %v181_v45 }
 0x13e   :  { %390 = vpow2.f32 %v183_v47 }
 0x13f   :  { %392 = vpow2.f32 %v185_v48 }
 0x146   :  { %v387_v49 = vpop.eup %386 }
 0x147   :  { %192 = vperm.xlu1 %385, %v387_v49   ;;  %v389_v51 = vpop.eup %388 }
 0x148   :  { %v391_v53 = vpop.eup %390 }
 0x149   :  { %v393_v55 = vpop.eup %392 }
 0x14b   :  { %195 = vperm.xlu1 %385, %v389_v51  }
 0x14f   :  { %198 = vperm.xlu1 %385, %v391_v53  }
 0x153   :  { %201 = vperm.xlu1 %385, %v393_v55  }
 0x157   :  { %235 = vperm.xlu1 %385, %v233_v57  }
 0x15b   :  { %278 = vperm.xlu1 %385, %v276_v58  }
 0x1c6   :  { %v193_v59 = vpop.permute.xlu1 %192 }
 0x1c7   :  { %v206_v0 = vrot.slane %v193_v59, %v562_v21 }
 0x1ca   :  { %v196_v60 = vpop.permute.xlu1 %195 }
 0x1cb   :  { %v210_v62 = vrot.slane %v196_v60, %v564_v22 }
 0x1cd   :  { %v211_v5 = vsel %vm120_vm0, %v210_v62, %v206_v0 }
 0x1ce   :  { %v199_v61 = vpop.permute.xlu1 %198 }
 0x1cf   :  { %v215_v1 = vrot.slane %v199_v61, %v562_v21 }
 0x1d2   :  { %v202_v63 = vpop.permute.xlu1 %201 }
 0x1d3   :  { %v219_v3 = vrot.slane %v202_v63, %v564_v22 }
 0x1d5   :  { %v220_v8 = vsel %vm120_vm0, %v219_v3, %v215_v1 }
 0x1d6   :  { %v236_v9 = vpop.permute.xlu1 %235  ;;  %v221_v10 = vsel %vm131_vm1, %v220_v8, %v211_v5 }
 0x1d7   :  { %vm237_vm7 = vcmp.eq.s32.totalorder %v558_v15, %v236_v9  ;;  %v223_v11 = vsel %vm134_vm2, %v221_v10, 0.0 }
 0x1d8   :  { %v367_v13 = vsel %vm237_vm7, 1.0, %v471_v12  ;;  %224 = vadd.xlane.f32.xlu1 %v223_v11 }
 0x1d9   :  { %v240_v14 = vmul.f32 %v367_v13, %v573_v34 }
 0x1da   :  { %v279_v16 = vpop.permute.xlu1 %278 }
 0x1db   :  { %vm280_vm8 = vcmp.eq.s32.totalorder %v558_v15, %v279_v16  ;;  %v241_v17 = vsel %vm134_vm2, %v240_v14, 0.0  ;;  %v365_v15 = vld [vmem:[%s661_s2] ss:$0 sm:$0xff]  ;;  %s472_s2 = smov [#allocation4]  }
 0x1dc   :  { %v369_v18 = vsel %vm280_vm8, 1.0, %v471_v12  ;;  %242 = vadd.xlane.f32.xlu0 %v241_v17  ;;  %v80_v27 = vmul.f32 %v365_v15, %v542_v4  ;;  %v82_v28 = vmul.f32 %v365_v15, %v553_v7  ;;  %v79_v7 = vmul.f32 %v365_v15, %v534_v2  ;;  %s328_s23 = sshll.u32 %s472_s2, 4  ;;  %s329_s23 = int_to_ptr.vmem [resolvable:$true] %s328_s23 }
 0x1dd   :  { %v283_v19 = vmul.f32 %v369_v18, %v573_v34  ;;  %v81_v41 = vmul.f32 %v365_v15, %v548_v6  ;;  %s400_s24 = scalar_lea.vmem %s329_s23, 32  ;;  %p405_p1 = scmp.lt.s32.totalorder %s329_s23, %s329_s23 }
 0x1de   :  { %p401_p0 = scmp.ne.s32.totalorder %s329_s23, %s400_s24  ;;  %p406_p2 = scmp.lt.s32.totalorder %s400_s24, %s400_s24 }
 0x1df   :  { %v284_v20 = vsel %vm134_vm2, %v283_v19, 0.0 }
 0x1e0   :  { %285 = vadd.xlane.f32.xlu0 %v284_v20  ;;  %p407_p3 = por %p406_p2, %p405_p1 }
 0x1e2   :  { %p408_p4 = pnand %p407_p3, %p401_p0 }
 0x1e4   :  { %262 = vadd.xlane.f32.xlu0 %v261_v24 }
 0x1e8   :  { %304 = vadd.xlane.f32.xlu0 %v303_v26 }
 0x1ec   :  { %85 = vadd.xlane.f32.xlu0 %v80_v27 }
 0x1f0   :  { %89 = vadd.xlane.f32.xlu0 %v82_v28 }
 0x265   :  { %v225_v29 = vpop.xlane.xlu1 %224 }
 0x266   :  { %394 = vlog2.f32 %v225_v29 }
 0x269   :  { %v243_v30 = vpop.xlane.xlu0 %242 }
 0x26d   :  { %v286_v34 = vpop.xlane.xlu0 %285 }
 0x270   :  { %v395_v31 = vpop.eup %394 }
 0x271   :  { %v227_v32 = vmul.f32 0.6931472, %v395_v31 }
 0x273   :  { %v228_v33 = vadd.f32 %v227_v32, %v579_v38 }
 0x275   :  { %v247_v35 = vsub.f32 %v228_v33, %v243_v30  ;;  %v290_v36 = vsub.f32 %v228_v33, %v286_v34 }
 0x277   :  { %v248_v37 = vmul.f32 %v368_v23, %v247_v35  ;;  %v291_v40 = vmul.f32 %v370_v25, %v290_v36 }
 0x279   :  { %v250_v39 = vsel %vm249_vm10, %v248_v37, 0.0  ;;  %v292_v4 = vsel %vm249_vm10, %v291_v40, 0.0 }
 0x27a   :  { %251 = vadd.xlane.f32.xlu1 %v250_v39 }
 0x27e   :  { %293 = vadd.xlane.f32.xlu1 %v292_v4 }
 0x282   :  { %83 = vadd.xlane.f32.xlu1 %v79_v7 }
 0x286   :  { %87 = vadd.xlane.f32.xlu1 %v81_v41 }
 0x297   :  { %98 = vperm.xlu1 %385, %v366_v42  }
 0x298   :  { %411 = shalt.err (!%p408_p4)
}
 0x299   :  { %s412_s27 = scalar_lea.hbm %s665_s7, 32 }
 0x29a   :  { %p413_p5 = scmp.ne.s32.totalorder %s665_s7, %s412_s27  ;;  %p416_p6 = scmp.lt.u32.totalorder %s412_s27, %s665_s7 }
 0x29c   :  { %p418_p7 = pnand %p416_p6, %p413_p5 }
 0x29e   :  { %421 = shalt.err (!%p418_p7)
}
 0x29f   :  { %331 = dma.vmem_to_hbm [thread:$0]  %s329_s23, 32, %s665_s7, [#allocation5]   ;;  %v263_v2 = vpop.xlane.xlu0 %262 }
 0x2a0   :  { %v264_v6 = vrot.slane %v263_v2, 4  ;;  %s473_s7 = smov [#allocation6]  }
 0x2a1   :  { %s338_s13 = sshll.u32 %s473_s7, 4  ;;  %s339_s13 = int_to_ptr.vmem [resolvable:$true] %s338_s13 }
 0x2a2   :  { %v265_v43 = vadd.f32 %v264_v6, %v263_v2  ;;  %s422_s14 = scalar_lea.vmem %s339_s13, 32  ;;  %p427_p9 = scmp.lt.s32.totalorder %s339_s13, %s339_s13 }
 0x2a3   :  { %v305_v38 = vpop.xlane.xlu0 %304  ;;  %p423_p8 = scmp.ne.s32.totalorder %s339_s13, %s422_s14  ;;  %p428_p10 = scmp.lt.s32.totalorder %s422_s14, %s422_s14 }
 0x2a4   :  { %v306_v44 = vrot.slane %v305_v38, 4  ;;  %v266_v45 = vrot.slane %v265_v43, 2 }
 0x2a5   :  { %p429_p11 = por %p428_p10, %p427_p9 }
 0x2a6   :  { %v307_v46 = vadd.f32 %v306_v44, %v305_v38  ;;  %v267_v52 = vadd.f32 %v266_v45, %v265_v43 }
 0x2a7   :  { %v86_v58 = vpop.xlane.xlu0 %85  ;;  %p430_p12 = pnand %p429_p11, %p423_p8 }
 0x2a8   :  { %v308_v50 = vrot.slane %v307_v46, 2  ;;  %v268_v59 = vrot.slane %v267_v52, 1 }
 0x2aa   :  { %v309_v60 = vadd.f32 %v308_v50, %v307_v46  ;;  %v269_v3 = vadd.f32 %v268_v59, %v267_v52 }
 0x2ab   :  { %v90_v9 = vpop.xlane.xlu0 %89 }
 0x2ac   :  { %v310_v5 = vrot.slane %v309_v60, 1 }
 0x2ae   :  { %v311_v12 = vadd.f32 %v310_v5, %v309_v60 }
 0x307   :  { %v252_v47 = vpop.xlane.xlu1 %251 }
 0x308   :  { %v253_v48 = vrot.slane %v252_v47, 4 }
 0x30a   :  { %v254_v49 = vadd.f32 %v253_v48, %v252_v47 }
 0x30b   :  { %v294_v51 = vpop.xlane.xlu1 %293 }
 0x30c   :  { %v255_v53 = vrot.slane %v254_v49, 2  ;;  %v295_v54 = vrot.slane %v294_v51, 4 }
 0x30e   :  { %v296_v55 = vadd.f32 %v295_v54, %v294_v51  ;;  %v256_v56 = vadd.f32 %v255_v53, %v254_v49 }
 0x30f   :  { %v84_v57 = vpop.xlane.xlu1 %83 }
 0x310   :  { %v297_v61 = vrot.slane %v296_v55, 2  ;;  %v257_v62 = vrot.slane %v256_v56, 1 }
 0x312   :  { %v258_v63 = vadd.f32 %v257_v62, %v256_v56  ;;  %v298_v0 = vadd.f32 %v297_v61, %v296_v55 }
 0x313   :  { %v88_v1 = vpop.xlane.xlu1 %87 }
 0x314   :  { %371 = vpush %v258_v63  ;;  %v299_v8 = vrot.slane %v298_v0, 1 }
 0x315   :  { %373 = vpush %v269_v3 }
 0x316   :  { %v300_v10 = vadd.f32 %v299_v8, %v298_v0 }
 0x317   :  { %v99_v11 = vpop.permute.xlu1 %98 }
 0x318   :  { %v101_v13 = vadd.f32 %v99_v11, %v84_v57  ;;  %v102_v14 = vadd.f32 %v99_v11, %v86_v58  ;;  %v103_v16 = vadd.f32 %v99_v11, %v88_v1  ;;  %v104_v17 = vadd.f32 %v99_v11, %v90_v9  ;;  %375 = vpush %v300_v10 }
 0x319   :  { %377 = vpush %v311_v12 }
 0x31a   :  { %v143_v18 = vrot.slane %v101_v13, %v562_v21  ;;  %v147_v19 = vrot.slane %v102_v14, %v564_v22  ;;  %v152_v20 = vrot.slane %v103_v16, %v562_v21  ;;  %v156_v23 = vrot.slane %v104_v17, %v564_v22 }
 0x31c   :  { %v148_v24 = vsel %vm120_vm0, %v147_v19, %v143_v18  ;;  %v157_v25 = vsel %vm120_vm0, %v156_v23, %v152_v20 }
 0x31d   :  { %v158_v26 = vsel %vm131_vm1, %v157_v25, %v148_v24 }
 0x31e   :  { %160 = vst.msk [vmem:[#allocation6] sm:$0x3] %vm134_vm2, %v158_v26 }
 0x31f   :  { %433 = shalt.err (!%p430_p12)
}
 0x320   :  { %s434_s17 = scalar_lea.hbm %s666_s8, 32 }
 0x321   :  { %p435_p13 = scmp.ne.s32.totalorder %s666_s8, %s434_s17  ;;  %p438_p0 = scmp.lt.u32.totalorder %s434_s17, %s666_s8 }
 0x323   :  { %p440_p1 = pnand %p438_p0, %p435_p13 }
 0x325   :  { %443 = shalt.err (!%p440_p1)
}
 0x326   :  { %341 = dma.vmem_to_hbm [thread:$0]  %s339_s13, 32, %s666_s8, [#allocation7]   ;;  %vm320_vm12 = vcmask 0  }
 0x327   :  { %s474_s6 = smov [#allocation8]  }
 0x328   :  { %s348_s2 = sshll.u32 %s474_s6, 4  ;;  %s349_s2 = int_to_ptr.vmem [resolvable:$true] %s348_s2 }
 0x329   :  { %s444_s8 = scalar_lea.vmem %s349_s2, 16  ;;  %s448_s23 = scalar_lea.vmem %s349_s2, 32 }
 0x32a   :  { %p445_p2 = scmp.ne.s32.totalorder %s349_s2, %s444_s8  ;;  %p449_p3 = scmp.lt.s32.totalorder %s349_s2, %s349_s2 }
 0x32b   :  { %p450_p4 = scmp.lt.s32.totalorder %s448_s23, %s444_s8 }
 0x32d   :  { %p451_p5 = por %p450_p4, %p449_p3 }
 0x32f   :  { %p452_p6 = pnand %p451_p5, %p445_p2 }
 0x345   :  { %s372_s1 = spop %371 }
 0x346   :  { %s374_s21 = spop %373  ;;  %v260_v28 = vstv %s372_s1 }
 0x347   :  { %v271_v21 = vstv %s374_s21 }
 0x348   :  { %396 = vrcp.f32 %v271_v21 }
 0x349   :  { %s376_s22 = spop %375 }
 0x34a   :  { %s378_s5 = spop %377  ;;  %v302_v29 = vstv %s376_s22 }
 0x34b   :  { %v313_v22 = vstv %s378_s5 }
 0x34c   :  { %398 = vrcp.f32 %v313_v22 }
 0x352   :  { %v397_v15 = vpop.eup %396 }
 0x353   :  { %v315_v30 = vmul.f32 %v397_v15, %v260_v28 }
 0x356   :  { %v399_v27 = vpop.eup %398 }
 0x357   :  { %v317_v31 = vmul.f32 %v399_v27, %v302_v29 }
 0x359   :  { %v318_v32 = vadd.f32 %v317_v31, %v315_v30 }
 0x35b   :  { %v319_v33 = vmul.f32 0.5, %v318_v32 }
 0x35d   :  { %321 = vst.msk [vmem:[#allocation8] sm:$0x1] %vm320_vm12, %v319_v33 }
 0x35e   :  { %455 = shalt.err (!%p452_p6)
}
 0x35f   :  { %s456_s26 = scalar_lea.hbm %s667_s9, 16 }
 0x360   :  { %p457_p7 = scmp.ne.s32.totalorder %s667_s9, %s456_s26  ;;  %p460_p8 = scmp.lt.u32.totalorder %s456_s26, %s667_s9 }
 0x362   :  { %p462_p9 = pnand %p460_p8, %p457_p7 }
 0x364   :  { %465 = shalt.err (!%p462_p9)
}
 0x365   :  { %351 = dma.vmem_to_hbm [thread:$0]  %s349_s2, 16, %s667_s9, [#allocation7]  }
 0x366   :  { %466 = dma.done.wait [#allocation5], 32  }
 0x367   :  { %467 = vsyncadd [#allocation5], 4294967264 }
 0x368   :  { %468 = dma.done.wait [#allocation7], 48  }
 0x369   :  { %469 = vsyncadd [#allocation7], 4294967248 }
 0x36a   :  { %361 = vsyncpa [#allocation5], 1 }
 0x36b   :  { %362 = vsyncpa [#allocation7], 1 }

// kernel: squad_forward.2
= control target key start
LH: loop header
LB: loop body
LE: loop exit
PB: predicated region body
PF: predicated region fallthrough
CT: control target
= control target key end

     0   :  { %s3996_s0 = inlined_call_operand.vmem [shape: f32[2,16,128], index: 0, kind: input, shape index: {}]   ;;  %s3997_s1 = inlined_call_operand.vmem [shape: f32[2,1,16], index: 1, kind: input, shape index: {}]   ;;  %s3998_s2 = inlined_call_operand.vmem [shape: f32[1,128], index: 2, kind: input, shape index: {}]   ;;  %s3999_s3 = inlined_call_operand.vmem [shape: f32[1,128], index: 3, kind: input, shape index: {}]   ;;  %s4000_s4 = inlined_call_operand.vmem [shape: bf16[2,128,384], index: 4, kind: input, shape index: {}]   ;;  %s4001_s5 = inlined_call_operand.vmem [shape: f32[2,1,384], index: 5, kind: input, shape index: {}]   ;;  %s4002_s6 = inlined_call_operand.vmem [shape: bf16[2,128,128], index: 6, kind: input, shape index: {}]   ;;  %s4003_s7 = inlined_call_operand.vmem [shape: f32[2,1,128], index: 7, kind: input, shape index: {}]   ;;  %s4004_s8 = inlined_call_operand.vmem [shape: f32[2,1,128], index: 8, kind: input, shape index: {}]   ;;  %s4005_s9 = inlined_call_operand.vmem [shape: f32[2,1,128], index: 9, kind: input, shape index: {}]   ;;  %s4006_s10 = inlined_call_operand.vmem [shape: bf16[2,128,256], index: 10, kind: input, shape index: {}]   ;;  %s4007_s11 = inlined_call_operand.vmem [shape: f32[2,1,256], index: 11, kind: input, shape index: {}]   ;;  %s4008_s12 = inlined_call_operand.hbm [shape: bf16[2,256,128], index: 12, kind: input, shape index: {}]   ;;  %s4009_s13 = inlined_call_operand.vmem [shape: f32[2,1,128], index: 13, kind: input, shape index: {}]   ;;  %s4010_s14 = inlined_call_operand.vmem [shape: f32[2,1,128], index: 14, kind: input, shape index: {}]   ;;  %s4011_s15 = inlined_call_operand.vmem [shape: f32[2,1,128], index: 15, kind: input, shape index: {}]   ;;  %s4012_s16 = inlined_call_operand.vmem [shape: f32[2,16,128], index: 16, kind: output, shape index: {}]  }
   0x1   :  { %4021 = sst [smem:[#allocation16_spill]] %s3996_s0 }
   0x2   :  { %4022 = sst [smem:[#allocation17_spill]] %s3997_s1 }
   0x3   :  { %4023 = sst [smem:[#allocation18_spill]] %s3998_s2 }
   0x4   :  { %4024 = sst [smem:[#allocation19_spill]] %s3999_s3 }
   0x5   :  { %4025 = sst [smem:[#allocation20_spill]] %s4000_s4 }
   0x6   :  { %4026 = sst [smem:[#allocation21_spill]] %s4001_s5 }
   0x7   :  { %4027 = sst [smem:[#allocation22_spill]] %s4002_s6 }
   0x8   :  { %4028 = sst [smem:[#allocation23_spill]] %s4005_s9 }
   0x9   :  { %4029 = sst [smem:[#allocation24_spill]] %s4006_s10 }
   0xa   :  { %4030 = sst [smem:[#allocation25_spill]] %s4008_s12 }
   0xb   :  { %4031 = sst [smem:[#allocation26_spill]] %s4011_s15 }
   0xc   :  { %4032 = sst [smem:[#allocation27_spill]] %s4012_s16 }
   0xd   :  { %21 = vsyncpa [#allocation4], 0 }
   0xe   :  { %23 = vsyncpa [#allocation4 + $0x1], 0  ;;  %s3483_s21 = smov 0   ;;  %s3485_s22 = smov 0  }
   0xf   :  { %s3487_s23 = smov 0   ;;  %s3489_s24 = smov 0  }
  0x10   :  { %s3491_s25 = smov 0   ;;  %s3493_s26 = smov 0  }
  0x11   :  { %s3495_s27 = smov 0   ;;  %s3497_s28 = smov 0  }
  0x12 LB: > { %4033 = sst [smem:[#allocation6_spill]] %s3363_s22  ;;  %s2700_s29 = sadd.s32 4294967295, %s3387_s28   ;;  %s3387_s28 = sphi %s3497_s28, %s29_s28   ;;  %s3383_s27 = sphi %s3495_s27, %s4076_s27   ;;  %s3379_s26 = sphi %s3493_s26, %s4075_s26   ;;  %s3375_s25 = sphi %s3491_s25, %s4074_s25   ;;  %s3371_s24 = sphi %s3489_s24, %s4073_s24   ;;  %s3367_s23 = sphi %s3487_s23, %s4072_s23   ;;  %s3363_s22 = sphi %s3485_s22, %s4071_s22   ;;  %s3359_s21 = sphi %s3483_s21, %s4070_s21  }
  0x13   : > { %4034 = sst [smem:[#allocation7_spill]] %s3367_s23  ;;  %s38_s30 = sadd.s32 1, %s3379_s26 }
  0x14   : > { %4035 = sst [smem:[#allocation8_spill]] %s3379_s26  ;;  %p39_p0 = scmp.ge.s32.totalorder %s38_s30, 2 }
  0x15   : > { %4036 = sst [smem:[#allocation9_spill]] %s3383_s27  ;;  %s41_s0 = sadd.s32 1, %s3383_s27 }
  0x16   : > { %4037 = sst [smem:[#allocation10_spill]] %s3387_s28  ;;  %s350_s17 = sadd.s32 1, %s3367_s23 }
  0x17   : > { %p357_p1 = scmp.ne.s32.totalorder %s3367_s23, %s3363_s22  ;;  %s4078_s30 = smov (%p39_p0, %s38_s30), 0 }
  0x18   : > { %4038 = sst [smem:[#allocation11_spill]] %s4078_s30  ;;  %s4080_s0 = smov (!%p39_p0, %s41_s0), %s3383_s27 }
  0x19   : > { %s347_s18 = ssub.s32 %s3379_s26, %s4078_s30  ;;  %p358_p2 = scmp.eq.s32.totalorder %s3387_s28, 0 }
  0x1a   : > { %p43_p3 = scmp.ge.s32.totalorder %s4080_s0, 2  ;;  %p348_p4 = scmp.eq.s32.totalorder %s347_s18, 0 }
  0x1b   : > { %p3533_p5 = por %p358_p2, %p357_p1  ;;  %p363_p6 = scmp.ne.s32.totalorder %s3363_s22, %s3359_s21 }
  0x1c   : > { %s4082_s0 = smov (%p43_p3, %s4080_s0), 0  ;;  %p364_p7 = scmp.eq.s32.totalorder %s2700_s29, 0 }
  0x1d   : > { %4040 = sst [smem:[#allocation12_spill]] %s4082_s0  ;;  %p3041_p8 = scmp.lt.s32.totalorder %s3387_s28, 4 }
  0x1e   : > { %s3541_s20 = scalar_select %p348_p4, %s3367_s23, %s350_s17  }
  0x1f   : > { %s567_s3 = sand.u32 1, %s3367_s23   ;;  %p3545_p9 = por %p364_p7, %p363_p6 }
  0x20   : > { %4041 = sst [smem:[#allocation13_spill]] %s3541_s20  ;;  %s2704_s30 = sshll.u32 %s567_s3, 7 }
  0x21   : > { %s2820_s27 = sshll.u32 %s3379_s26, 11  ;;  %s4043_s12 = sld [smem:[#allocation25_spill]] }
  0x22   : > { %s571_s21 = scalar_lea.vmem [#allocation3], %s2704_s30  ;;  %p3557_p10 = pnand %p3041_p8, %p3533_p5 }
  0x23   : > { %s578_s17 = sshll.u32 %s571_s21, 4  ;;  %s3563_s0 = scalar_lea.sflag [#allocation4], %s567_s3  ;;  %s3561_s17 = int_to_ptr.vmem [resolvable:$true] %s578_s17 }
  0x24   : > { %p3293_p12 = pneg %p3557_p10 }
  0x27   : > { %s3553_s15 = scalar_lea.hbm %s4043_s12, %s2820_s27  ;;  %s3296_s19 = scalar_lea.hbm %s4043_s12, 4096 }
  0x28   : > { %s3291_s16 = scalar_lea.hbm %s3553_s15, 2048  ;;  %p3297_p1 = scmp.lt.u32.totalorder %s3553_s15, %s4043_s12 }
  0x29   : > { %p3292_p11 = scmp.ne.s32.totalorder %s3553_s15, %s3291_s16  ;;  %p3298_p2 = scmp.lt.u32.totalorder %s3296_s19, %s3291_s16 }
  0x2a   : > { %p3300_p4 = scmp.lt.u32.totalorder %s3291_s16, %s3553_s15 }
  0x2b   : > { %p3294_p13 = pnand %p3293_p12, %p3292_p11  ;;  %p3299_p3 = por %p3298_p2, %p3297_p1 }
  0x2d   : > { %p3295_p0 = pneg %p3294_p13  ;;  %p3301_p5 = por %p3300_p4, %p3299_p3 }
  0x2f   : > { %p3302_p6 = pnand %p3301_p5, %p3295_p0 }
  0x31   : > { %3305 = shalt.err (!%p3302_p6)
}
  0x32   : > { %s3306_s3 = scalar_lea.vmem %s3561_s17, 2048  ;;  %s3389_s27 = smov [#allocation3]  }
  0x33   : > { %p3307_p7 = scmp.ne.s32.totalorder %s3561_s17, %s3306_s3  ;;  %s3311_s30 = sshll.u32 %s3389_s27, 4  ;;  %s3312_s30 = int_to_ptr.vmem [resolvable:$false] %s3311_s30 }
  0x34   : > { %s3313_s18 = scalar_lea.vmem %s3312_s30, 4096  ;;  %p3314_p13 = scmp.lt.s32.totalorder %s3561_s17, %s3312_s30 }
  0x35   : > { %p3309_p8 = pnand %p3307_p7, %p3293_p12  ;;  %p3315_p1 = scmp.lt.s32.totalorder %s3313_s18, %s3306_s3 }
  0x37   : > { %p3310_p11 = pneg %p3309_p8  ;;  %p3316_p2 = por %p3315_p1, %p3314_p13 }
  0x39   : > { %p3317_p3 = pnand %p3316_p2, %p3310_p11 }
  0x3b   : > { %3320 = shalt.err (!%p3317_p3)
}
  0x3c   : > { %s3390_s16 = smov 64   ;;  %s3391_s19 = smov 4  }
  0x3d   : > { %3040 = dma.hbm_to_vmem [thread:$0]  (!%p3557_p10), %s3553_s15, 2048, %s3561_s17, %s3563_s0, %s3390_s16, %s3390_s16, %s3391_s19  }
  0x3e   : > { %p2707_p12 = scmp.ge.s32.totalorder %s3387_s28, 1  ;;  %p604_p0 = scmp.lt.s32.totalorder %s3387_s28, 5 }
  0x40   : > { %p605_p4 = pnand %p2707_p12, %p604_p0 }
  0x42   : > { %608 = sbr.rel (%p605_p4) target bundleno = 3948 (0xf6c), region = 84 }
  0x49   : > { %s610_s21 = sand.u32 1, %s3363_s22  }
  0x4a   : > { %s2708_s3 = sshll.u32 %s610_s21, 7  ;;  %s611_s27 = scalar_lea.sflag [#allocation4], %s610_s21 }
  0x4b   : > { %s3594_s30 = scalar_lea.vmem [#allocation3], %s2708_s3 }
  0x4c   : > { %4045 = sst [smem:[#allocation14_spill]] %s3594_s30 }
  0x4d   : > { %3354 = dma.done.wait (%p3545_p9), %s611_s27, 2048  }
  0x4e   : > { %3356 = vsyncadd (%p3545_p9), %s611_s27, 4294965248  ;;  %p712_p10 = scmp.lt.s32.totalorder %s3375_s25, 1  ;;  %p720_p5 = scmp.lt.s32.totalorder %s3371_s24, 1 }
  0x4f   : > { %s4048_s19 = sld [smem:[#allocation16_spill]]  ;;  %s4049_s4 = sld [smem:[#allocation20_spill]] }
  0x50   : > { %s4084_s25 = smov (!%p712_p10, %s3375_s25), 1  ;;  %s4050_s6 = sld [smem:[#allocation22_spill]] }
  0x51   : > { %4046 = sst [smem:[#allocation15_spill]] %s4084_s25  ;;  %s2821_s2 = sshll.u32 %s4084_s25, 4 }
  0x52   : > { %s3606_s15 = scalar_select %p720_p5, %s3371_s24, 1 }
  0x53   : > { %s4051_s5 = sld [smem:[#allocation21_spill]]  ;;  %s4053_s10 = sld [smem:[#allocation24_spill]] }
  0x54   : > { %s3033_s3 = smul.u32 192, %s3606_s15  ;;  %s2822_s12 = sshll.u32 %s3606_s15, 6 }
  0x55   : > { %s716_s21 = scalar_lea.vmem %s4048_s19, %s2821_s2  ;;  %s3034_s27 = smul.u32 3, %s3606_s15 }
  0x56   : > { %s3622_s23 = scalar_lea.vmem %s4049_s4, %s3033_s3  ;;  %s3627_s0 = scalar_lea.vmem %s4050_s6, %s2822_s12 }
  0x57   : > { %s2823_s22 = sshll.u32 %s3606_s15, 7  ;;  %s2716_s12 = sshll.u32 %s3606_s15, 1 }
  0x58   : > { %s3656_s16 = scalar_lea.vmem %s4007_s11, %s2716_s12  ;;  %s754_s1 = scalar_lea.vmem %s4009_s13, %s3606_s15 }
  0x59   : > { %s3632_s18 = scalar_lea.vmem %s4051_s5, %s3034_s27  ;;  %s3651_s29 = scalar_lea.vmem %s4053_s10, %s2823_s22 }
  0x5a   : > { %s757_s20 = scalar_lea.vmem %s4010_s14, %s3606_s15  ;;  %s4054_s5 = sld [smem:[#allocation26_spill]] }
  0x5b   : > { %s4055_s28 = sld [smem:[#allocation27_spill]]  ;;  %p2719_p9 = scmp.ne.s32.totalorder %s3371_s24, 0 }
  0x5c   : > { %v771_v0 = vld [vmem:[%s716_s21] sm:$0xff] (!%p2719_p9)  ;;  %v772_v1 = vld [vmem:[%s716_s21 + $0x8] sm:$0xff] (!%p2719_p9)  ;;  %s4056_s30 = sld [smem:[#allocation18_spill]] (!%p2719_p9)  ;;  %s4057_s26 = sld [smem:[#allocation19_spill]] (!%p2719_p9) }
  0x5d   : > { %770 = sbr.rel (%p2719_p9) target bundleno = 409 (0x199), region = 92  ;;  %775 = vadd.xlane.f32.xlu0 (!%p2719_p9), %v771_v0 }
  0x60   : > { %s760_s9 = scalar_lea.vmem %s4054_s5, %s3606_s15 }
  0x61   : > { %s3673_s10 = scalar_lea.vmem %s4055_s28, %s2821_s2  ;;  %777 = vadd.xlane.f32.xlu0 (!%p2719_p9), %v772_v1 }
  0x62   : > { %v2720_v17 = vld [vmem:[%s4056_s30] ss:$0 sm:$0xff] (!%p2719_p9) }
  0x63   : > { %v2721_v19 = vld [vmem:[%s4057_s26] ss:$0 sm:$0xff] (!%p2719_p9) }
  0xea   : > { %v776_v2 = vpop.xlane.xlu0 %775 }
  0xeb   : > { %v780_v3 = vmul.f32 0.0078125, %v776_v2 }
  0xed   : > { %v782_v4 = vsub.f32 %v771_v0, %v780_v3 }
  0xee   : > { %v778_v5 = vpop.xlane.xlu0 %777 }
  0xef   : > { %v781_v6 = vmul.f32 0.0078125, %v778_v5  ;;  %v784_v7 = vmul.f32 %v782_v4, %v782_v4 }
  0xf1   : > { %v783_v8 = vsub.f32 %v772_v1, %v781_v6  ;;  %786 = vadd.xlane.f32.xlu1 %v784_v7 }
  0xf3   : > { %v785_v9 = vmul.f32 %v783_v8, %v783_v8 }
  0xf5   : > { %788 = vadd.xlane.f32.xlu1 %v785_v9 }
 0x17e   : > { %v787_v10 = vpop.xlane.xlu1 %786 }
 0x17f   : > { %v790_v11 = vmul.f32 0.0078125, %v787_v10 }
 0x181   : > { %v792_v12 = vadd.f32 1e-12, %v790_v11 }
 0x182   : > { %v789_v13 = vpop.xlane.xlu1 %788 }
 0x183   : > { %3114 = vrsqrt.f32 %v792_v12  ;;  %v791_v14 = vmul.f32 0.0078125, %v789_v13 }
 0x185   : > { %v793_v15 = vadd.f32 1e-12, %v791_v14 }
 0x187   : > { %3116 = vrsqrt.f32 %v793_v15 }
 0x18d   : > { %v3115_v16 = vpop.eup %3114 }
 0x18e   : > { %v796_v18 = vmul.f32 %v3115_v16, %v782_v4 }
 0x190   : > { %v804_v20 = vmul.f32 %v2720_v17, %v796_v18 }
 0x191   : > { %v3117_v21 = vpop.eup %3116 }
 0x192   : > { %v812_v22 = vadd.f32 %v2721_v19, %v804_v20  ;;  %v797_v23 = vmul.f32 %v3117_v21, %v783_v8 }
 0x194   : > { %814 = vst [vmem:[#allocation2] sm:$0xff] %v812_v22  ;;  %v805_v24 = vmul.f32 %v2720_v17, %v797_v23 }
 0x196   : > { %v813_v25 = vadd.f32 %v2721_v19, %v805_v24 }
 0x198   : > { %815 = vst [vmem:[#allocation2 + $0x8] sm:$0xff] %v813_v25 }
 0x199 PF: > { %v3163_v26 = vld [vmem:[%s3622_s23 + $0x4] ss:$12 sps:$4 sm:$0xff]   ;;  %v3165_v27 = vld [vmem:[%s3622_s23] ss:$12 sps:$4 sm:$0xff]   ;;  %v3392_v28 = vmov 0   ;;  %v853_v46 = vlaneseq  ;;  %v3393_v53 = vmov 0.0   ;;  %s4063_s22 = scalar_lea.vmem %s4003_s7, %s3606_s15 }
 0x19a   : > { %1028 = vmatprep.mubr.bf16.mxu0 %v3392_v28  ;;  %996 = vmatprep.subr.bf16.mxu0 %v3163_v26  ;;  %v3166_v29 = vld [vmem:[%s3622_s23 + $0x1c] ss:$12 sps:$4 sm:$0xff]   ;;  %v3168_v30 = vld [vmem:[%s3622_s23 + $0x18] ss:$12 sps:$4 sm:$0xff]   ;;  %v3169_v31 = vld [vmem:[%s3622_s23 + $0x34] ss:$12 sps:$4 sm:$0xff]  }
 0x19b   : > { %997 = vmatpush1.bf16.msra.mxu0 %v3165_v27  ;;  %v3171_v32 = vld [vmem:[%s3622_s23 + $0x30] ss:$12 sps:$4 sm:$0xff]   ;;  %v3172_v33 = vld [vmem:[%s3622_s23 + $0x4c] ss:$12 sps:$4 sm:$0xff]   ;;  %v3174_v34 = vld [vmem:[%s3622_s23 + $0x48] ss:$12 sps:$4 sm:$0xff]   ;;  %2897 = vmatprep.subr.bf16.mxu1 %v3393_v53 }
 0x19c   : > { %998 = vmatprep.subr.bf16.mxu0 %v3166_v29  ;;  %v3175_v35 = vld [vmem:[%s3622_s23 + $0x64] ss:$12 sps:$4 sm:$0xff]   ;;  %v3177_v36 = vld [vmem:[%s3622_s23 + $0x60] ss:$12 sps:$4 sm:$0xff]   ;;  %v3178_v37 = vld [vmem:[%s3622_s23 + $0x7c] ss:$12 sps:$4 sm:$0xff]  }
 0x19d   : > { %v3180_v38 = vld [vmem:[%s3622_s23 + $0x78] ss:$12 sps:$4 sm:$0xff]   ;;  %v3181_v39 = vld [vmem:[%s3622_s23 + $0x94] ss:$12 sps:$4 sm:$0xff]   ;;  %v3183_v40 = vld [vmem:[%s3622_s23 + $0x90] ss:$12 sps:$4 sm:$0xff]  }
 0x19e   : > { %v3184_v41 = vld [vmem:[%s3622_s23 + $0xac] ss:$12 sps:$4 sm:$0xff]   ;;  %v3186_v42 = vld [vmem:[%s3622_s23 + $0xa8] ss:$12 sps:$4 sm:$0xff]   ;;  %v3699_v43 = vld [vmem:[#allocation2] sm:$0xff]  ;;  %v3705_v47 = vshrl.u32 %v853_v46, 7 }
 0x19f   : > { %999 = vmatpush1.bf16.msra.mxu0 %v3168_v30  ;;  %v3701_v44 = vld [vmem:[#allocation2 + $0x8] sm:$0xff]  ;;  %v3709_v49 = vld [vmem:[%s3632_s18] sm:$0x7]  ;;  %vm3394_vm0 = vmmov 0   ;;  %vm1089_vm1 = vcmask 261120   ;;  %s3395_s18 = smov 64  }
 0x1a0   : > { %1000 = vmatprep.subr.bf16.mxu0 %v3169_v31  ;;  %v818_v45 = vpack.c.bf16 %v3701_v44, %v3699_v43  ;;  %v855_v48 = vsub.s32 0, %v3705_v47  ;;  %v859_v50 = vsub.s32 1, %v3705_v47  ;;  %v3187_v52 = vld [vmem:[%s3622_s23 + $0x8] ss:$12 sps:$4 sm:$0xff]   ;;  %2913 = vmatprep.mubr.msk.bf16.mxu1 %vm3394_vm0, %v3393_v53  ;;  %v3188_v56 = vld [vmem:[%s3622_s23 + $0x20] ss:$12 sps:$4 sm:$0xff]   ;;  %vm3730_vm2 = vmpackc.low %vm1089_vm1, %vm1089_vm1 }
 0x1a1   : > { %2898 = vmatpush3.bf16.msra.mxu1 %v3187_v52  ;;  %v3189_v1 = vld [vmem:[%s3622_s23 + $0x38] ss:$12 sps:$4 sm:$0xff]   ;;  %v3190_v4 = vld [vmem:[%s3622_s23 + $0x50] ss:$12 sps:$4 sm:$0xff]   ;;  %s3396_s12 = smov 96   ;;  %s4060_s27 = sld [smem:[#allocation15_spill]] }
 0x1a2   : > { %v856_v51 = vrot.slane %v3709_v49, %v855_v48  ;;  %v860_v55 = vrot.slane %v3709_v49, %v859_v50  ;;  %2899 = vmatprep.subr.bf16.mxu1 %v3393_v53  ;;  %v3191_v6 = vld [vmem:[%s3622_s23 + $0x68] ss:$12 sps:$4 sm:$0xff]   ;;  %v3192_v8 = vld [vmem:[%s3622_s23 + $0x80] ss:$12 sps:$4 sm:$0xff]   ;;  %v3193_v9 = vld [vmem:[%s3622_s23 + $0x98] ss:$12 sps:$4 sm:$0xff]  }
 0x1a3   : > { %1001 = vmatpush1.bf16.msra.mxu0 %v3171_v32  ;;  %v3194_v10 = vld [vmem:[%s3622_s23 + $0xb0] ss:$12 sps:$4 sm:$0xff]   ;;  %s4061_s25 = sld [smem:[#allocation17_spill]]  ;;  %vm1177_vm3 = vcmask 130048   ;;  %v863_v18 = vsub.s32 2, %v3705_v47  ;;  %s3397_s23 = smov 32  }
 0x1a4   : > { %1002 = vmatprep.subr.bf16.mxu0 %v3172_v33  ;;  %vm1909_vm4 = vcmask 523264   ;;  %vm1912_vm5 = vcmask 785408   ;;  %s4064_s28 = sld [smem:[#allocation14_spill]]  ;;  %s4066_s21 = sld [smem:[#allocation23_spill]] }
 0x1a5   : > { %2900 = vmatpush3.bf16.msra.mxu1 %v3188_v56  ;;  %v864_v20 = vrot.slane %v3709_v49, %v863_v18  ;;  %p2817_p6 = scmp.ne.s32.totalorder %s3371_s24, 1 }
 0x1a6   : > { %2901 = vmatprep.subr.bf16.mxu1 %v3393_v53 }
 0x1a7   : > { %1003 = vmatpush1.bf16.msra.mxu0 %v3174_v34 }
 0x1a8   : > { %1004 = vmatprep.subr.bf16.mxu0 %v3175_v35 }
 0x1a9   : > { %2902 = vmatpush3.bf16.msra.mxu1 %v3189_v1  ;;  %s4062_s3 = scalar_lea.vmem %s4061_s25, %s4060_s27 }
 0x1aa   : > { %2903 = vmatprep.subr.bf16.mxu1 %v3393_v53  ;;  %v3765_v11 = vld [vmem:[%s4062_s3] ss:$0 sm:$0xff]  ;;  %s4067_s26 = scalar_lea.vmem %s4066_s21, %s3606_s15 }
 0x1ab   : > { %1005 = vmatpush1.bf16.msra.mxu0 %v3177_v36 }
 0x1ac   : > { %1006 = vmatprep.subr.bf16.mxu0 %v3178_v37 }
 0x1ad   : > { %2904 = vmatpush3.bf16.msra.mxu1 %v3190_v4 }
 0x1ae   : > { %2905 = vmatprep.subr.bf16.mxu1 %v3393_v53 }
 0x1af   : > { %1007 = vmatpush1.bf16.msra.mxu0 %v3180_v38 }
 0x1b0   : > { %1008 = vmatprep.subr.bf16.mxu0 %v3181_v39 }
 0x1b1   : > { %2906 = vmatpush3.bf16.msra.mxu1 %v3191_v6 }
 0x1b2   : > { %2907 = vmatprep.subr.bf16.mxu1 %v3393_v53 }
 0x1b3   : > { %1009 = vmatpush1.bf16.msra.mxu0 %v3183_v40 }
 0x1b4   : > { %1010 = vmatprep.subr.bf16.mxu0 %v3184_v41 }
 0x1b5   : > { %2908 = vmatpush3.bf16.msra.mxu1 %v3192_v8 }
 0x1b6   : > { %2909 = vmatprep.subr.bf16.mxu1 %v3393_v53 }
 0x1b7   : > { %1011 = vmatpush1.bf16.msra.mxu0 %v3186_v42 }
 0x1b9   : > { %2910 = vmatpush3.bf16.msra.mxu1 %v3193_v9 }
 0x1ba   : > { %1029 = vmatmul.mubr.bf16.vlgmr.msra.gmra.mrb[0].mxu0 %v818_v45  ;;  %2911 = vmatprep.subr.bf16.mxu1 %v3393_v53 }
 0x1bd   : > { %2912 = vmatpush3.bf16.msra.mxu1 %v3194_v10 }
 0x1c0   : > { %2914 = vmatmul.mubr.bf16.vlgmr.msra.gmra.mrb[0].mxu1 %v818_v45 }
 0x28d   : > { %v1030_v54 = vpop.f32.mrb[0].mxu0 }
 0x28e   : > { %v1031_v57 = vadd.f32 %v1030_v54, %v856_v51  ;;  %v1032_v58 = vpop.f32.mrb[1].mxu0 }
 0x28f   : > { %v1034_v59 = vpop.f32.mrb[2].mxu0  ;;  %v1033_v62 = vadd.f32 %v1032_v58, %v860_v55 }
 0x290   : > { %v3724_v60 = vmul.f32 0.17677669, %v1031_v57  ;;  %v1036_v61 = vpop.f32.mrb[3].mxu0  ;;  %v1035_v5 = vadd.f32 %v1034_v59, %v856_v51 }
 0x291   : > { %v1037_v63 = vadd.f32 %v1036_v61, %v860_v55 }
 0x292   : > { %2921 = vmatprep.mubr.msk.f32.mxu0 %vm1089_vm1, %v3724_v60  ;;  %v3749_v7 = vmul.f32 0.17677669, %v1035_v5 }
 0x293   : > { %v3736_v2 = vpack.i.bf16 %v1037_v63, %v1033_v62  ;;  %v2993_v3 = vpack.c.bf16 %v1037_v63, %v1033_v62  ;;  %v1073_v19 = vpop.f32.mrb[0].mxu1 }
 0x294   : > { %v2915_v21 = vpop.f32.mrb[1].mxu1  ;;  %v3773_v23 = vadd.f32 %v1073_v19, %v864_v20 }
 0x295   : > { %3124 = vrot.lane.b32.xlu1 %v3736_v2, %s3395_s18  ;;  %2995 = vmatprep.subr.msk.bf16.mxu0 %vm3730_vm2, %v2993_v3  ;;  %v1076_v22 = vpop.f32.mrb[2].mxu1 }
 0x296   : > { %2998 = vmatpush3.bf16.xpose.msk.msra.mxu0 %vm3730_vm2, %v2993_v3  ;;  %v3775_v24 = vadd.f32 %v1076_v22, %v864_v20  ;;  %v2916_v25 = vpop.f32.mrb[3].mxu1 }
 0x298   : > { %v2999_v26 = vpack.c.bf16 %v3775_v24, %v3773_v23  ;;  %v3823_v22 = vpack.i.bf16 %v3775_v24, %v3773_v23 }
 0x299   : > { %1281 = vrot.lane.b32.xlu1 %v3724_v60, %s3396_s12 }
 0x29a   : > { %3000 = vmatprep.subr.bf16.mxu0 %v2999_v26 }
 0x29d   : > { %2922 = vmatmul.mubr.msk.f32.vlgmr.msra.gmra.mrb[4].mxu0 %vm1089_vm1, %v3749_v7 }
 0x29e   : > { %3002 = vmatpush3.bf16.msra.mxu0 %v2999_v26 }
 0x307   : > { %v3125_v42 = vpop.permute.xlu1 %3124 }
 0x308   : > { %v3127_v54 = vunpack.i.h.bf16 %v3125_v42  ;;  %v3126_v55 = vunpack.i.l.bf16 %v3125_v42 }
 0x30a   : > { %v3013_v58 = vpack.c.bf16 %v3127_v54, %v3126_v55 }
 0x30b   : > { %v1282_v45 = vpop.permute.xlu1 %1281 }
 0x370   : > { %v2923_v12 = vpop.f32.mrb[4].mxu0 }
 0x371   : > { %v1168_v13 = vpop.f32.mrb[5].mxu0  ;;  %v1174_v15 = vadd.f32 %v2923_v12, %v3765_v11 }
 0x372   : > { %v1169_v14 = vadd.f32 %v3765_v11, %v1168_v13 }
 0x373   : > { %v1181_v17 = vsel %vm1177_vm3, %v1174_v15, -inf }
 0x374   : > { %v1178_v16 = vsel %vm1177_vm3, %v1169_v14, -inf }
 0x375   : > { %1179 = vmax.xlane.f32.xlu0 %v1178_v16 }
 0x379   : > { %1182 = vmax.xlane.f32.xlu0 %v1181_v17 }
 0x38f   : > { %3119 = vrot.lane.b32.xlu0 %v3736_v2, %s3396_s12 }
 0x393   : > { %1483 = vrot.lane.b32.xlu0 %v3724_v60, %s3395_s18 }
 0x402   : > { %v1180_v27 = vpop.xlane.xlu0 %1179 }
 0x403   : > { %v1184_v29 = vsub.f32 %v1169_v14, %v1180_v27 }
 0x405   : > { %v1186_v32 = vmul.f32 1.442695, %v1184_v29 }
 0x406   : > { %v1183_v30 = vpop.xlane.xlu0 %1182 }
 0x407   : > { %v1185_v31 = vsub.f32 %v1174_v15, %v1183_v30 }
 0x409   : > { %v1188_v33 = vmul.f32 1.442695, %v1185_v31 }
 0x40a   : > { %v3120_v34 = vpop.permute.xlu0 %3119 }
 0x40b   : > { %3243 = vpow2.f32 %v1188_v33  ;;  %v3122_v35 = vunpack.i.h.bf16 %v3120_v34  ;;  %v3121_v36 = vunpack.i.l.bf16 %v3120_v34 }
 0x40c   : > { %3245 = vpow2.f32 %v1186_v32 }
 0x40d   : > { %v3003_v37 = vpack.c.bf16 %v3122_v35, %v3121_v36 }
 0x40e   : > { %v1484_v61 = vpop.permute.xlu0 %1483 }
 0x40f   : > { %3005 = vmatprep.subr.msk.bf16.mxu0 %vm3730_vm2, %v3003_v37 }
 0x415   : > { %v3244_v38 = vpop.eup %3243 }
 0x416   : > { %v1193_v39 = vsel %vm1177_vm3, %v3244_v38, 0.0  ;;  %v3246_v40 = vpop.eup %3245 }
 0x417   : > { %1194 = vadd.xlane.f32.xlu1 %v1193_v39  ;;  %v1190_v41 = vsel %vm1177_vm3, %v3246_v40, 0.0 }
 0x41b   : > { %1191 = vadd.xlane.f32.xlu1 %v1190_v41 }
 0x42c   : > { %1283 = vrot.lane.b32.xlu1 %v3749_v7, %s3396_s12 }
 0x430   : > { %1485 = vrot.lane.b32.xlu1 %v3749_v7, %s3395_s18 }
 0x4a4   : > { %v1195_v46 = vpop.xlane.xlu1 %1194 }
 0x4a5   : > { %3247 = vrcp.f32 %v1195_v46 }
 0x4a8   : > { %v1192_v49 = vpop.xlane.xlu1 %1191 }
 0x4a9   : > { %3249 = vrcp.f32 %v1192_v49 }
 0x4ac   : > { %v1284_v59 = vpop.permute.xlu1 %1283 }
 0x4af   : > { %v3248_v51 = vpop.eup %3247 }
 0x4b0   : > { %v1199_v57 = vmul.f32 %v3248_v51, %v3244_v38  ;;  %v1486_v62 = vpop.permute.xlu1 %1485 }
 0x4b3   : > { %v3250_v52 = vpop.eup %3249 }
 0x4b4   : > { %v1198_v56 = vmul.f32 %v3250_v52, %v3246_v40 }
 0x4b6   : > { %2928 = vmatprep.mubr.msk.f32.mxu0 %vm1177_vm3, %v1198_v56 }
 0x4b7   : > { %2929 = vmatmul.mubr.msk.f32.vlgmr.msra.gmra.mrb[6].mxu0 %vm1177_vm3, %v1199_v57 }
 0x4b8   : > { %3008 = vmatpush3.bf16.xpose.msk.msra.mxu0 %vm3730_vm2, %v3003_v37  ;;  %2935 = vmatprep.mubr.msk.f32.mxu0 %vm1089_vm1, %v1282_v45 }
 0x4b9   : > { %3015 = vmatprep.subr.msk.bf16.mxu0 %vm3730_vm2, %v3013_v58 }
 0x4bf   : > { %2936 = vmatmul.mubr.msk.f32.vlgmr.msra.gmra.mrb[8].mxu0 %vm1089_vm1, %v1284_v59 }
 0x4c0   : > { %3018 = vmatpush3.bf16.xpose.msk.msra.mxu0 %vm3730_vm2, %v3013_v58  ;;  %2949 = vmatprep.mubr.msk.f32.mxu0 %vm1089_vm1, %v1484_v61 }
 0x4c7   : > { %2950 = vmatmul.mubr.msk.f32.vlgmr.msra.gmra.mrb[10].mxu0 %vm1089_vm1, %v1486_v62 }
 0x58a   : > { %v3803_v63 = vpop.f32.mrb[6].mxu0 }
 0x58b   : > { %v3805_v1 = vpop.f32.mrb[7].mxu0 }
 0x592   : > { %v2937_v3 = vpop.f32.mrb[8].mxu0 }
 0x593   : > { %v1363_v4 = vpop.f32.mrb[9].mxu0  ;;  %v1369_v13 = vadd.f32 %v2937_v3, %v3765_v11 }
 0x594   : > { %v1364_v32 = vadd.f32 %v3765_v11, %v1363_v4 }
 0x595   : > { %v1375_v14 = vsel %vm1177_vm3, %v1369_v13, -inf }
 0x596   : > { %v1372_v33 = vsel %vm1177_vm3, %v1364_v32, -inf }
 0x59a   : > { %v2951_v5 = vpop.f32.mrb[10].mxu0 }
 0x59b   : > { %v1571_v6 = vadd.f32 %v2951_v5, %v3765_v11  ;;  %v1565_v8 = vpop.f32.mrb[11].mxu0 }
 0x59c   : > { %v1566_v9 = vadd.f32 %v3765_v11, %v1565_v8 }
 0x59d   : > { %v1577_v10 = vsel %vm1177_vm3, %v1571_v6, -inf }
 0x59e   : > { %1578 = vmax.xlane.f32.xlu1 %v1577_v10  ;;  %v1574_v12 = vsel %vm1177_vm3, %v1566_v9, -inf }
 0x59f   : > { %1575 = vmax.xlane.f32.xlu0 %v1574_v12 }
 0x5af   : > { %3134 = vrot.lane.b32.xlu1 %v3736_v2, %s3397_s23 }
 0x5b3   : > { %1683 = vrot.lane.b32.xlu1 %v3724_v60, %s3397_s23 }
 0x5b7   : > { %1685 = vrot.lane.b32.xlu1 %v3749_v7, %s3397_s23 }
 0x5db   : > { %1376 = vmax.xlane.f32.xlu1 %v1375_v14 }
 0x62b   : > { %v1579_v15 = vpop.xlane.xlu1 %1578 }
 0x62c   : > { %v1581_v16 = vsub.f32 %v1571_v6, %v1579_v15  ;;  %v1576_v17 = vpop.xlane.xlu0 %1575 }
 0x62d   : > { %v1580_v18 = vsub.f32 %v1566_v9, %v1576_v17 }
 0x62e   : > { %v1584_v19 = vmul.f32 1.442695, %v1581_v16 }
 0x62f   : > { %v1582_v20 = vmul.f32 1.442695, %v1580_v18  ;;  %v3135_v25 = vpop.permute.xlu1 %3134 }
 0x630   : > { %3251 = vpow2.f32 %v1584_v19  ;;  %v3137_v37 = vunpack.i.h.bf16 %v3135_v25  ;;  %v3136_v38 = vunpack.i.l.bf16 %v3135_v25 }
 0x631   : > { %3253 = vpow2.f32 %v1582_v20 }
 0x632   : > { %v3023_v42 = vpack.c.bf16 %v3137_v37, %v3136_v38  ;;  %v3197_v37 = vld [vmem:[%s3627_s0 + $0x10] sm:$0xff]   ;;  %v3198_v38 = vld [vmem:[%s3627_s0 + $0x18] sm:$0xff]  }
 0x633   : > { %v1684_v26 = vpop.permute.xlu1 %1683 }
 0x637   : > { %v1686_v27 = vpop.permute.xlu1 %1685 }
 0x63a   : > { %v3252_v2 = vpop.eup %3251 }
 0x63b   : > { %v1589_v21 = vsel %vm1177_vm3, %v3252_v2, 0.0  ;;  %v3254_v60 = vpop.eup %3253 }
 0x63c   : > { %1590 = vadd.xlane.f32.xlu0 %v1589_v21  ;;  %v1586_v7 = vsel %vm1177_vm3, %v3254_v60, 0.0 }
 0x640   : > { %1587 = vadd.xlane.f32.xlu0 %v1586_v7 }
 0x656   : > { %3129 = vrot.lane.b32.xlu0 %v3823_v22, %s3395_s18 }
 0x668   : > { %v1377_v29 = vpop.xlane.xlu1 %1376 }
 0x669   : > { %v1379_v30 = vsub.f32 %v1369_v13, %v1377_v29 }
 0x66b   : > { %v1382_v31 = vmul.f32 1.442695, %v1379_v30 }
 0x66d   : > { %3255 = vpow2.f32 %v1382_v31 }
 0x675   : > { %1373 = vmax.xlane.f32.xlu0 %v1372_v33 }
 0x677   : > { %v3829_v34 = vpop.eup %3255 }
 0x678   : > { %v1387_v23 = vsel %vm1177_vm3, %v3829_v34, 0.0 }
 0x679   : > { %1388 = vadd.xlane.f32.xlu1 %v1387_v23 }
 0x6c9   : > { %v1591_v24 = vpop.xlane.xlu0 %1590 }
 0x6ca   : > { %3257 = vrcp.f32 %v1591_v24 }
 0x6cd   : > { %v1588_v35 = vpop.xlane.xlu0 %1587 }
 0x6ce   : > { %3259 = vrcp.f32 %v1588_v35 }
 0x6d1   : > { %v3130_v36 = vpop.permute.xlu0 %3129 }
 0x6d2   : > { %v3132_v39 = vunpack.i.h.bf16 %v3130_v36  ;;  %v3131_v40 = vunpack.i.l.bf16 %v3130_v36  ;;  %v3196_v36 = vld [vmem:[%s3627_s0 + $0x8] sm:$0xff]  }
 0x6d4   : > { %v3019_v41 = vpack.c.bf16 %v3132_v39, %v3131_v40  ;;  %v3258_v45 = vpop.eup %3257  ;;  %v3199_v39 = vld [vmem:[%s3627_s0 + $0x20] sm:$0xff]   ;;  %v3200_v40 = vld [vmem:[%s3627_s0 + $0x28] sm:$0xff]  }
 0x6d5   : > { %v1595_v51 = vmul.f32 %v3258_v45, %v3252_v2 }
 0x6d6   : > { %3020 = vmatprep.subr.bf16.mxu0 %v3019_v41 }
 0x6d7   : > { %3022 = vmatpush3.bf16.msra.mxu0 %v3019_v41  ;;  %v3201_v41 = vld [vmem:[%s3627_s0 + $0x30] sm:$0xff]  }
 0x6d8   : > { %v3260_v46 = vpop.eup %3259  ;;  %3025 = vmatprep.subr.msk.bf16.mxu0 %vm3730_vm2, %v3023_v42 }
 0x6d9   : > { %v1594_v49 = vmul.f32 %v3260_v46, %v3254_v60 }
 0x6db   : > { %2956 = vmatprep.mubr.msk.f32.mxu0 %vm1177_vm3, %v1594_v49 }
 0x6dc   : > { %2957 = vmatmul.mubr.msk.f32.vlgmr.msra.gmra.mrb[12].mxu0 %vm1177_vm3, %v1595_v51 }
 0x6dd   : > { %2963 = vmatprep.mubr.msk.f32.mxu0 %vm1089_vm1, %v1684_v26 }
 0x6e0   : > { %3028 = vmatpush3.bf16.xpose.msk.msra.mxu0 %vm3730_vm2, %v3023_v42  ;;  %v3202_v42 = vld [vmem:[%s3627_s0 + $0x38] sm:$0xff]  }
 0x6e7   : > { %2964 = vmatmul.mubr.msk.f32.vlgmr.msra.gmra.mrb[14].mxu0 %vm1089_vm1, %v1686_v27 }
 0x6e8   : > { %2212 = vmatprep.mubr.bf16.mxu0 %v3392_v28 }
 0x702   : > { %v1374_v52 = vpop.xlane.xlu0 %1373 }
 0x703   : > { %v1378_v56 = vsub.f32 %v1364_v32, %v1374_v52 }
 0x705   : > { %v1380_v58 = vmul.f32 1.442695, %v1378_v56 }
 0x706   : > { %v1389_v20 = vpop.xlane.xlu1 %1388 }
 0x707   : > { %3261 = vpow2.f32 %v1380_v58 }
 0x711   : > { %v3262_v4 = vpop.eup %3261 }
 0x712   : > { %v1384_v5 = vsel %vm1177_vm3, %v3262_v4, 0.0 }
 0x7af   : > { %v3842_v54 = vpop.f32.mrb[12].mxu0 }
 0x7b0   : > { %v3844_v55 = vpop.f32.mrb[13].mxu0 }
 0x7b1   : > { %v3153_v57 = vpack.i.bf16 %v3842_v54, %v3844_v55 }
 0x7ba   : > { %v2965_v59 = vpop.f32.mrb[14].mxu0 }
 0x7bb   : > { %v1765_v61 = vpop.f32.mrb[15].mxu0  ;;  %v1771_v62 = vadd.f32 %v2965_v59, %v3765_v11 }
 0x7bc   : > { %v1766_v0 = vadd.f32 %v3765_v11, %v1765_v61 }
 0x7bd   : > { %v1777_v28 = vsel %vm1177_vm3, %v1771_v62, -inf }
 0x7be   : > { %v1774_v3 = vsel %vm1177_vm3, %v1766_v0, -inf }
 0x7bf   : > { %1775 = vmax.xlane.f32.xlu0 %v1774_v3 }
 0x7c3   : > { %1778 = vmax.xlane.f32.xlu0 %v1777_v28 }
 0x7c7   : > { %1385 = vadd.xlane.f32.xlu0 %v1384_v5 }
 0x84c   : > { %v1776_v6 = vpop.xlane.xlu0 %1775 }
 0x84d   : > { %v1780_v8 = vsub.f32 %v1766_v0, %v1776_v6 }
 0x84f   : > { %v1782_v9 = vmul.f32 1.442695, %v1780_v8 }
 0x850   : > { %v1779_v10 = vpop.xlane.xlu0 %1778 }
 0x851   : > { %3263 = vpow2.f32 %v1782_v9  ;;  %v1781_v12 = vsub.f32 %v1771_v62, %v1779_v10  ;;  %v2771_v10 = vld [vmem:[%s4063_s22] ss:$0 sm:$0xff] }
 0x853   : > { %v1784_v13 = vmul.f32 1.442695, %v1781_v12 }
 0x854   : > { %v1386_v14 = vpop.xlane.xlu0 %1385 }
 0x855   : > { %3265 = vpow2.f32 %v1784_v13 }
 0x856   : > { %3267 = vrcp.f32 %v1386_v14 }
 0x857   : > { %3269 = vrcp.f32 %v1389_v20  ;;  %v3206_v20 = vld [vmem:[%s3651_s29 + $0x10] ss:$8 sps:$4 sm:$0xff]  }
 0x85b   : > { %v3264_v11 = vpop.eup %3263 }
 0x85c   : > { %v1786_v15 = vsel %vm1177_vm3, %v3264_v11, 0.0 }
 0x85d   : > { %1787 = vadd.xlane.f32.xlu0 %v1786_v15 }
 0x85f   : > { %v3266_v16 = vpop.eup %3265 }
 0x860   : > { %v3268_v17 = vpop.eup %3267  ;;  %v1789_v18 = vsel %vm1177_vm3, %v3266_v16, 0.0 }
 0x861   : > { %1790 = vadd.xlane.f32.xlu1 %v1789_v18  ;;  %v1392_v19 = vmul.f32 %v3268_v17, %v3262_v4  ;;  %v3270_v27 = vpop.eup %3269  ;;  %v3203_v17 = vld [vmem:[%s3651_s29] ss:$8 sps:$4 sm:$0xff]   ;;  %v3205_v18 = vld [vmem:[%s3651_s29 + $0x4] ss:$8 sps:$4 sm:$0xff]  }
 0x862   : > { %2180 = vmatprep.subr.bf16.mxu0 %v3205_v18 }
 0x863   : > { %2942 = vmatprep.mubr.msk.f32.mxu1 %vm1177_vm3, %v1392_v19  ;;  %v3208_v19 = vld [vmem:[%s3651_s29 + $0x14] ss:$8 sps:$4 sm:$0xff]   ;;  %2181 = vmatpush1.bf16.msra.mxu0 %v3203_v17 }
 0x864   : > { %2182 = vmatprep.subr.bf16.mxu0 %v3208_v19 }
 0x867   : > { %2183 = vmatpush1.bf16.msra.mxu0 %v3206_v20 }
 0x872   : > { %3144 = vrot.lane.b32.xlu1 %v3823_v22, %s3397_s23 }
 0x873   : > { %3139 = vrot.lane.b32.xlu0 %v3823_v22, %s3396_s12  ;;  %v1393_v22 = vmul.f32 %v3270_v27, %v3829_v34  ;;  %v3195_v34 = vld [vmem:[%s3627_s0] sm:$0xff]  }
 0x874   : > { %v3211_v27 = vld [vmem:[%s3651_s29 + $0x24] ss:$8 sps:$4 sm:$0xff]  }
 0x875   : > { %2184 = vmatprep.subr.bf16.mxu0 %v3211_v27 }
 0x8ea   : > { %v1788_v2 = vpop.xlane.xlu0 %1787 }
 0x8eb   : > { %3271 = vrcp.f32 %v1788_v2 }
 0x8ee   : > { %v1791_v21 = vpop.xlane.xlu1 %1790  ;;  %v3140_v60 = vpop.permute.xlu0 %3139 }
 0x8ef   : > { %3273 = vrcp.f32 %v1791_v21  ;;  %v3142_v7 = vunpack.i.h.bf16 %v3140_v60  ;;  %v3141_v25 = vunpack.i.l.bf16 %v3140_v60 }
 0x8f1   : > { %v3009_v26 = vpack.c.bf16 %v3142_v7, %v3141_v25 }
 0x8f2   : > { %v3145_v29 = vpop.permute.xlu1 %3144 }
 0x8f3   : > { %v3147_v30 = vunpack.i.h.bf16 %v3145_v29  ;;  %v3146_v31 = vunpack.i.l.bf16 %v3145_v29  ;;  %3010 = vmatprep.subr.bf16.mxu1 %v3009_v26  ;;  %v3209_v29 = vld [vmem:[%s3651_s29 + $0x20] ss:$8 sps:$4 sm:$0xff]  }
 0x8f4   : > { %3012 = vmatpush3.bf16.msra.mxu1 %v3009_v26  ;;  %2185 = vmatpush1.bf16.msra.mxu0 %v3209_v29 }
 0x8f5   : > { %v3272_v32 = vpop.eup %3271  ;;  %v3029_v33 = vpack.c.bf16 %v3147_v30, %v3146_v31  ;;  %v3214_v30 = vld [vmem:[%s3651_s29 + $0x34] ss:$8 sps:$4 sm:$0xff]   ;;  %v3212_v31 = vld [vmem:[%s3651_s29 + $0x30] ss:$8 sps:$4 sm:$0xff]  }
 0x8f6   : > { %v1794_v23 = vmul.f32 %v3272_v32, %v3264_v11  ;;  %2186 = vmatprep.subr.bf16.mxu0 %v3214_v30  ;;  %v3217_v32 = vld [vmem:[%s3651_s29 + $0x44] ss:$8 sps:$4 sm:$0xff]  }
 0x8f7   : > { %2943 = vmatmul.mubr.msk.f32.vlgmr.msra.gmra.mrb[4].mxu1 %vm1177_vm3, %v1393_v22  ;;  %3030 = vmatprep.subr.bf16.mxu1 %v3029_v33  ;;  %v3215_v22 = vld [vmem:[%s3651_s29 + $0x40] ss:$8 sps:$4 sm:$0xff]  }
 0x8f8   : > { %3032 = vmatpush3.bf16.msra.mxu1 %v3029_v33  ;;  %2970 = vmatprep.mubr.msk.f32.mxu1 %vm1177_vm3, %v1794_v23  ;;  %v3220_v33 = vld [vmem:[%s3651_s29 + $0x54] ss:$8 sps:$4 sm:$0xff]   ;;  %v3218_v23 = vld [vmem:[%s3651_s29 + $0x50] ss:$8 sps:$4 sm:$0xff]  }
 0x8f9   : > { %v3274_v24 = vpop.eup %3273  ;;  %2973 = vmatprep.subr.bf16.mxu1 %v3393_v53  ;;  %2187 = vmatpush1.bf16.msra.mxu0 %v3212_v31 }
 0x8fa   : > { %v1795_v35 = vmul.f32 %v3274_v24, %v3266_v16  ;;  %2188 = vmatprep.subr.bf16.mxu0 %v3217_v32  ;;  %v3223_v24 = vld [vmem:[%s3651_s29 + $0x64] ss:$8 sps:$4 sm:$0xff]  }
 0x8fc   : > { %2971 = vmatmul.mubr.msk.f32.vlgmr.msra.gmra.mrb[6].mxu1 %vm1177_vm3, %v1795_v35  ;;  %v3221_v35 = vld [vmem:[%s3651_s29 + $0x60] ss:$8 sps:$4 sm:$0xff]  }
 0x8fd   : > { %2989 = vmatprep.mubr.msk.bf16.mxu1 %vm3394_vm0, %v3393_v53  ;;  %2974 = vmatpush3.bf16.msra.mxu1 %v3195_v34  ;;  %v3226_v34 = vld [vmem:[%s3651_s29 + $0x74] ss:$8 sps:$4 sm:$0xff]  }
 0x8fe   : > { %2975 = vmatprep.subr.bf16.mxu1 %v3393_v53  ;;  %2189 = vmatpush1.bf16.msra.mxu0 %v3215_v22 }
 0x8ff   : > { %2190 = vmatprep.subr.bf16.mxu0 %v3220_v33 }
 0x901   : > { %2976 = vmatpush3.bf16.msra.mxu1 %v3196_v36  ;;  %v3224_v36 = vld [vmem:[%s3651_s29 + $0x70] ss:$8 sps:$4 sm:$0xff]   ;;  %s4065_s29 = scalar_lea.vmem %s4004_s8, %s3606_s15 }
 0x902   : > { %2977 = vmatprep.subr.bf16.mxu1 %v3393_v53  ;;  %2191 = vmatpush1.bf16.msra.mxu0 %v3218_v23 }
 0x903   : > { %2192 = vmatprep.subr.bf16.mxu0 %v3223_v24 }
 0x905   : > { %2978 = vmatpush3.bf16.msra.mxu1 %v3197_v37 }
 0x906   : > { %2979 = vmatprep.subr.bf16.mxu1 %v3393_v53  ;;  %2193 = vmatpush1.bf16.msra.mxu0 %v3221_v35 }
 0x907   : > { %2194 = vmatprep.subr.bf16.mxu0 %v3226_v34 }
 0x909   : > { %2980 = vmatpush3.bf16.msra.mxu1 %v3198_v38 }
 0x90a   : > { %2981 = vmatprep.subr.bf16.mxu1 %v3393_v53  ;;  %2195 = vmatpush1.bf16.msra.mxu0 %v3224_v36 }
 0x90d   : > { %2982 = vmatpush3.bf16.msra.mxu1 %v3199_v39 }
 0x90e   : > { %2983 = vmatprep.subr.bf16.mxu1 %v3393_v53 }
 0x911   : > { %2984 = vmatpush3.bf16.msra.mxu1 %v3200_v40 }
 0x912   : > { %2985 = vmatprep.subr.bf16.mxu1 %v3393_v53 }
 0x915   : > { %2986 = vmatpush3.bf16.msra.mxu1 %v3201_v41 }
 0x916   : > { %2987 = vmatprep.subr.bf16.mxu1 %v3393_v53 }
 0x919   : > { %2988 = vmatpush3.bf16.msra.mxu1 %v3202_v42 }
 0x9ca   : > { %v2944_v45 = vpop.f32.mrb[4].mxu1 }
 0x9cb   : > { %v1474_v46 = vpop.f32.mrb[5].mxu1 }
 0x9cc   : > { %v3148_v49 = vpack.i.bf16 %v2944_v45, %v1474_v46 }
 0x9ce   : > { %3149 = vrot.lane.b32.xlu1 %v3148_v49, %s3397_s23  ;;  %v2780_v49 = vld [vmem:[%s4065_s29] ss:$0 sm:$0xff] }
 0x9cf   : > { %v2972_v51 = vpop.f32.mrb[6].mxu1 }
 0x9d0   : > { %v1874_v52 = vpop.f32.mrb[7].mxu1 }
 0x9d1   : > { %v3158_v56 = vpack.i.bf16 %v2972_v51, %v1874_v52 }
 0x9d2   : > { %3154 = vrot.lane.b32.xlu1 %v3153_v57, %s3395_s18 }
 0x9d3   : > { %3159 = vrot.lane.b32.xlu0 %v3158_v56, %s3396_s12 }
 0xa40   : > { %v3150_v58 = vpop.permute.xlu1 %3149 }
 0xa41   : > { %v3152_v59 = vunpack.i.h.bf16 %v3150_v58  ;;  %v3151_v53 = vunpack.i.l.bf16 %v3150_v58  ;;  %v2781_v58 = vld [vmem:[%s4067_s26] ss:$0 sm:$0xff] }
 0xa43   : > { %v1908_v28 = vsel %vm1089_vm1, %v3803_v63, %v3152_v59  ;;  %v1907_v4 = vsel %vm1089_vm1, %v3805_v1, %v3151_v53 }
 0xa44   : > { %v3155_v61 = vpop.permute.xlu1 %3154 }
 0xa45   : > { %v3157_v0 = vunpack.i.h.bf16 %v3155_v61  ;;  %v3156_v62 = vunpack.i.l.bf16 %v3155_v61  ;;  %v3160_v3 = vpop.permute.xlu0 %3159 }
 0xa46   : > { %v3162_v54 = vunpack.i.h.bf16 %v3160_v3  ;;  %v3161_v55 = vunpack.i.l.bf16 %v3160_v3  ;;  %v3228_v3 = vld [vmem:[%s4064_s28] sm:$0xff]  }
 0xa47   : > { %v1910_v57 = vsel %vm1909_vm4, %v1907_v4, %v3156_v62  ;;  %v1911_v5 = vsel %vm1909_vm4, %v1908_v28, %v3157_v0  ;;  %v3227_v62 = vld [vmem:[%s4064_s28 + $0x40] sm:$0xff]   ;;  %v3229_v28 = vld [vmem:[%s4064_s28 + $0x48] sm:$0xff]  }
 0xa48   : > { %v1914_v6 = vsel %vm1912_vm5, %v1911_v5, %v3162_v54  ;;  %v1913_v8 = vsel %vm1912_vm5, %v1910_v57, %v3161_v55  ;;  %2875 = vmatprep.subr.bf16.mxu1 %v3227_v62  ;;  %v3230_v4 = vld [vmem:[%s4064_s28 + $0x8] sm:$0xff]   ;;  %v3231_v54 = vld [vmem:[%s4064_s28 + $0x50] sm:$0xff]   ;;  %v3233_v57 = vld [vmem:[%s4064_s28 + $0x58] sm:$0xff]  }
 0xa49   : > { %v1915_v9 = vpack.c.bf16 %v1914_v6, %v1913_v8  ;;  %v3232_v55 = vld [vmem:[%s4064_s28 + $0x10] sm:$0xff]   ;;  %v3234_v5 = vld [vmem:[%s4064_s28 + $0x18] sm:$0xff]   ;;  %v3235_v6 = vld [vmem:[%s4064_s28 + $0x60] sm:$0xff]  }
 0xa4a   : > { %v3236_v8 = vld [vmem:[%s4064_s28 + $0x20] sm:$0xff]  }
 0xa4b   : > { %2990 = vmatmul.mubr.bf16.vlgmr.msra.gmra.mrb[8].mxu1 %v1915_v9  ;;  %v3237_v9 = vld [vmem:[%s4064_s28 + $0x68] sm:$0xff]  }
 0xa4c   : > { %2876 = vmatpush3.bf16.msra.mxu1 %v3228_v3 }
 0xa4d   : > { %2877 = vmatprep.subr.bf16.mxu1 %v3229_v28 }
 0xa50   : > { %2878 = vmatpush3.bf16.msra.mxu1 %v3230_v4 }
 0xa51   : > { %2879 = vmatprep.subr.bf16.mxu1 %v3231_v54  ;;  %v2798_v54 = vld [vmem:[%s754_s1] ss:$0 sm:$0xff] }
 0xa54   : > { %2880 = vmatpush3.bf16.msra.mxu1 %v3232_v55 }
 0xa55   : > { %2881 = vmatprep.subr.bf16.mxu1 %v3233_v57 }
 0xa58   : > { %2882 = vmatpush3.bf16.msra.mxu1 %v3234_v5 }
 0xa59   : > { %2883 = vmatprep.subr.bf16.mxu1 %v3235_v6 }
 0xa5c   : > { %2884 = vmatpush3.bf16.msra.mxu1 %v3236_v8 }
 0xa5d   : > { %2885 = vmatprep.subr.bf16.mxu1 %v3237_v9 }
 0xb1e   : > { %v2021_v63 = vpop.f32.mrb[8].mxu1 }
 0xb1f   : > { %v2022_v12 = vadd.f32 %v2771_v10, %v2021_v63  ;;  %v2991_v1 = vpop.f32.mrb[9].mxu1  ;;  %v3239_v63 = vld [vmem:[%s4064_s28 + $0x70] sm:$0xff]  }
 0xb20   : > { %v2024_v13 = vpop.f32.mrb[10].mxu1  ;;  %v3241_v1 = vld [vmem:[%s4064_s28 + $0x78] sm:$0xff]  }
 0xb21   : > { %v2025_v14 = vadd.f32 %v2771_v10, %v2024_v13  ;;  %v2992_v11 = vpop.f32.mrb[11].mxu1  ;;  %v2028_v15 = vadd.f32 %v2022_v12, %v3699_v43  ;;  %v3238_v10 = vld [vmem:[%s4064_s28 + $0x28] sm:$0xff]   ;;  %v3240_v12 = vld [vmem:[%s4064_s28 + $0x30] sm:$0xff]   ;;  %v3242_v13 = vld [vmem:[%s4064_s28 + $0x38] sm:$0xff]  }
 0xb22   : > { %2886 = vmatpush3.bf16.msra.mxu1 %v3238_v10 }
 0xb23   : > { %2032 = vadd.xlane.f32.xlu1 %v2028_v15  ;;  %v2029_v16 = vadd.f32 %v2025_v14, %v3701_v44  ;;  %2887 = vmatprep.subr.bf16.mxu1 %v3239_v63  ;;  %v2088_v14 = vld [vmem:[%s3656_s16] sm:$0x3] }
 0xb24   : > { %v2093_v11 = vrot.slane %v2088_v14, %v855_v48 }
 0xb25   : > { %2034 = vadd.xlane.f32.xlu0 %v2029_v16 }
 0xb26   : > { %2888 = vmatpush3.bf16.msra.mxu1 %v3240_v12 }
 0xb27   : > { %2889 = vmatprep.subr.bf16.mxu1 %v3241_v1 }
 0xb2a   : > { %2890 = vmatpush3.bf16.msra.mxu1 %v3242_v13 }
 0xbb0   : > { %v2033_v2 = vpop.xlane.xlu1 %2032 }
 0xbb1   : > { %v2037_v21 = vmul.f32 0.0078125, %v2033_v2 }
 0xbb2   : > { %v2035_v60 = vpop.xlane.xlu0 %2034 }
 0xbb3   : > { %v2039_v43 = vsub.f32 %v2028_v15, %v2037_v21  ;;  %v2038_v44 = vmul.f32 0.0078125, %v2035_v60  ;;  %v2097_v15 = vrot.slane %v2088_v14, %v859_v50 }
 0xbb5   : > { %v2040_v7 = vsub.f32 %v2029_v16, %v2038_v44  ;;  %v2041_v25 = vmul.f32 %v2039_v43, %v2039_v43 }
 0xbb7   : > { %2043 = vadd.xlane.f32.xlu0 %v2041_v25  ;;  %v2042_v26 = vmul.f32 %v2040_v7, %v2040_v7 }
 0xbbb   : > { %2045 = vadd.xlane.f32.xlu0 %v2042_v26 }
 0xc44   : > { %v2044_v37 = vpop.xlane.xlu0 %2043 }
 0xc45   : > { %v2047_v38 = vmul.f32 0.0078125, %v2044_v37 }
 0xc47   : > { %v2049_v39 = vadd.f32 1e-12, %v2047_v38 }
 0xc48   : > { %v2046_v40 = vpop.xlane.xlu0 %2045 }
 0xc49   : > { %3275 = vrsqrt.f32 %v2049_v39  ;;  %v2048_v41 = vmul.f32 0.0078125, %v2046_v40 }
 0xc4b   : > { %v2050_v42 = vadd.f32 1e-12, %v2048_v41 }
 0xc4d   : > { %3277 = vrsqrt.f32 %v2050_v42 }
 0xc53   : > { %v3276_v45 = vpop.eup %3275 }
 0xc54   : > { %v2053_v46 = vmul.f32 %v3276_v45, %v2039_v43 }
 0xc56   : > { %v2061_v56 = vmul.f32 %v2780_v49, %v2053_v46 }
 0xc57   : > { %v3278_v51 = vpop.eup %3277 }
 0xc58   : > { %v2054_v52 = vmul.f32 %v3278_v51, %v2040_v7  ;;  %v3925_v53 = vadd.f32 %v2781_v58, %v2061_v56 }
 0xc5a   : > { %v2062_v59 = vmul.f32 %v2780_v49, %v2054_v52 }
 0xc5c   : > { %v3927_v61 = vadd.f32 %v2781_v58, %v2062_v59 }
 0xc5e   : > { %v2071_v0 = vpack.c.bf16 %v3927_v61, %v3925_v53 }
 0xc60   : > { %2213 = vmatmul.mubr.bf16.vlgmr.msra.gmra.mrb[16].mxu0 %v2071_v0 }
 0xd33   : > { %v2214_v16 = vpop.f32.mrb[16].mxu0 }
 0xd34   : > { %v2215_v17 = vadd.f32 %v2214_v16, %v2093_v11  ;;  %v2216_v18 = vpop.f32.mrb[17].mxu0 }
 0xd35   : > { %v2217_v19 = vadd.f32 %v2216_v18, %v2097_v15  ;;  %v2218_v20 = vpop.f32.mrb[18].mxu0 }
 0xd36   : > { %v2223_v2 = vmul.f32 %v2215_v17, %v2215_v17  ;;  %v2219_v21 = vadd.f32 %v2218_v20, %v2093_v11  ;;  %v2220_v60 = vpop.f32.mrb[19].mxu0 }
 0xd37   : > { %v2224_v43 = vmul.f32 %v2217_v19, %v2217_v19  ;;  %v2221_v44 = vadd.f32 %v2220_v60, %v2097_v15 }
 0xd38   : > { %v2227_v7 = vmul.f32 %v2223_v2, %v2215_v17  ;;  %v2225_v25 = vmul.f32 %v2219_v21, %v2219_v21 }
 0xd39   : > { %v2228_v26 = vmul.f32 %v2224_v43, %v2217_v19  ;;  %v2226_v27 = vmul.f32 %v2221_v44, %v2221_v44  ;;  %v2815_v43 = vld [vmem:[%s757_s20] ss:$0 sm:$0xff] }
 0xd3a   : > { %v2231_v29 = vmul.f32 0.044715, %v2227_v7  ;;  %v2229_v30 = vmul.f32 %v2225_v25, %v2219_v21  ;;  %v2816_v25 = vld [vmem:[%s760_s9] ss:$0 sm:$0xff] }
 0xd3b   : > { %v2232_v48 = vmul.f32 0.044715, %v2228_v26  ;;  %v2230_v31 = vmul.f32 %v2226_v27, %v2221_v44 }
 0xd3c   : > { %v2235_v47 = vadd.f32 %v2231_v29, %v2215_v17  ;;  %v2233_v50 = vmul.f32 0.044715, %v2229_v30 }
 0xd3d   : > { %v2236_v32 = vadd.f32 %v2232_v48, %v2217_v19  ;;  %v2234_v22 = vmul.f32 0.044715, %v2230_v31 }
 0xd3e   : > { %v2239_v33 = vmul.f32 0.7978846, %v2235_v47  ;;  %v2237_v23 = vadd.f32 %v2233_v50, %v2219_v21 }
 0xd3f   : > { %v2240_v24 = vmul.f32 0.7978846, %v2236_v32  ;;  %v2238_v35 = vadd.f32 %v2234_v22, %v2221_v44 }
 0xd40   : > { %3279 = vtanh.f32 %v2239_v33  ;;  %v2241_v34 = vmul.f32 0.7978846, %v2237_v23 }
 0xd41   : > { %3281 = vtanh.f32 %v2240_v24  ;;  %v2242_v36 = vmul.f32 0.7978846, %v2238_v35 }
 0xd42   : > { %3283 = vtanh.f32 %v2241_v34 }
 0xd43   : > { %3285 = vtanh.f32 %v2242_v36 }
 0xd4a   : > { %v3280_v37 = vpop.eup %3279 }
 0xd4b   : > { %v3282_v38 = vpop.eup %3281  ;;  %v2247_v39 = vadd.f32 1.0, %v3280_v37 }
 0xd4c   : > { %v3284_v40 = vpop.eup %3283  ;;  %v2248_v41 = vadd.f32 1.0, %v3282_v38 }
 0xd4d   : > { %v3286_v42 = vpop.eup %3285  ;;  %v2251_v45 = vmul.f32 0.5, %v2247_v39  ;;  %v2249_v46 = vadd.f32 1.0, %v3284_v40 }
 0xd4e   : > { %v2250_v49 = vadd.f32 1.0, %v3286_v42  ;;  %v2252_v51 = vmul.f32 0.5, %v2248_v41 }
 0xd4f   : > { %v2253_v52 = vmul.f32 0.5, %v2249_v46  ;;  %v2255_v58 = vmul.f32 %v2251_v45, %v2215_v17 }
 0xd50   : > { %v2254_v56 = vmul.f32 0.5, %v2250_v49  ;;  %v2256_v0 = vmul.f32 %v2252_v51, %v2217_v19 }
 0xd51   : > { %v2257_v59 = vmul.f32 %v2253_v52, %v2219_v21 }
 0xd52   : > { %v2258_v62 = vmul.f32 %v2254_v56, %v2221_v44 }
 0xd53   : > { %v2259_v3 = vpack.c.bf16 %v2257_v59, %v2255_v58 }
 0xd54   : > { %v2260_v28 = vpack.c.bf16 %v2258_v62, %v2256_v0 }
 0xd56   : > { %2428 = vmatprep.mubr.bf16.mxu1 %v2260_v28 }
 0xd57   : > { %2429 = vmatmul.mubr.bf16.vlgmr.msra.gmra.mrb[12].mxu1 %v2259_v3 }
 0xe2a   : > { %v2891_v4 = vpop.f32.mrb[12].mxu1 }
 0xe2b   : > { %v2892_v55 = vpop.f32.mrb[13].mxu1 }
 0xe2c   : > { %v2893_v57 = vadd.f32 %v2892_v55, %v2891_v4  ;;  %v2894_v5 = vpop.f32.mrb[14].mxu1 }
 0xe2d   : > { %v2895_v6 = vpop.f32.mrb[15].mxu1 }
 0xe2e   : > { %v2431_v8 = vadd.f32 %v2893_v57, %v2798_v54  ;;  %v2896_v9 = vadd.f32 %v2895_v6, %v2894_v5 }
 0xe30   : > { %v2434_v10 = vadd.f32 %v2896_v9, %v2798_v54  ;;  %v2437_v63 = vadd.f32 %v2431_v8, %v3925_v53 }
 0xe32   : > { %2441 = vadd.xlane.f32.xlu1 %v2437_v63  ;;  %v2438_v12 = vadd.f32 %v2434_v10, %v3927_v61 }
 0xe34   : > { %2443 = vadd.xlane.f32.xlu0 %v2438_v12 }
 0xebf   : > { %v2442_v1 = vpop.xlane.xlu1 %2441 }
 0xec0   : > { %v2445_v13 = vmul.f32 0.0078125, %v2442_v1 }
 0xec1   : > { %v2444_v14 = vpop.xlane.xlu0 %2443 }
 0xec2   : > { %v2447_v11 = vsub.f32 %v2437_v63, %v2445_v13  ;;  %v2446_v15 = vmul.f32 0.0078125, %v2444_v14 }
 0xec4   : > { %v2448_v16 = vsub.f32 %v2438_v12, %v2446_v15  ;;  %v2449_v17 = vmul.f32 %v2447_v11, %v2447_v11 }
 0xec6   : > { %2451 = vadd.xlane.f32.xlu1 %v2449_v17  ;;  %v2450_v18 = vmul.f32 %v2448_v16, %v2448_v16 }
 0xec8   : > { %2453 = vadd.xlane.f32.xlu0 %v2450_v18 }
 0xf53   : > { %v2452_v19 = vpop.xlane.xlu1 %2451 }
 0xf54   : > { %v2455_v20 = vmul.f32 0.0078125, %v2452_v19 }
 0xf55   : > { %v2454_v2 = vpop.xlane.xlu0 %2453 }
 0xf56   : > { %v2457_v53 = vadd.f32 1e-12, %v2455_v20  ;;  %v2456_v21 = vmul.f32 0.0078125, %v2454_v2 }
 0xf58   : > { %3287 = vrsqrt.f32 %v2457_v53  ;;  %v2458_v61 = vadd.f32 1e-12, %v2456_v21 }
 0xf5a   : > { %3289 = vrsqrt.f32 %v2458_v61 }
 0xf62   : > { %v3288_v60 = vpop.eup %3287 }
 0xf63   : > { %v2461_v44 = vmul.f32 %v3288_v60, %v2447_v11 }
 0xf64   : > { %v3290_v7 = vpop.eup %3289 }
 0xf65   : > { %v2469_v26 = vmul.f32 %v2815_v43, %v2461_v44  ;;  %v2462_v27 = vmul.f32 %v3290_v7, %v2448_v16  ;;  %2484 = sbr.rel (%p2817_p6) target bundleno = 3948 (0xf6c), region = 96 }
 0xf67   : > { %v2477_v29 = vadd.f32 %v2816_v25, %v2469_v26  ;;  %v2470_v30 = vmul.f32 %v2815_v43, %v2462_v27 }
 0xf69   : > { %2479 = vst [vmem:[#allocation2] sm:$0xff] %v2477_v29  ;;  %v2478_v48 = vadd.f32 %v2816_v25, %v2470_v30  ;;  %2485 = vst [vmem:[%s3673_s10] sm:$0xff] (!%p2817_p6), %v2477_v29 }
 0xf6b   : > { %2480 = vst [vmem:[#allocation2 + $0x8] sm:$0xff] %v2478_v48  ;;  %2486 = vst [vmem:[%s3673_s10 + $0x8] sm:$0xff] (!%p2817_p6), %v2478_v48 }
 0xf6c PF: > { %s4069_s20 = sld [smem:[#allocation10_spill]]  ;;  %s4070_s21 = sld [smem:[#allocation6_spill]] }
 0xf6d   : > { %s4071_s22 = sld [smem:[#allocation7_spill]]  ;;  %s4072_s23 = sld [smem:[#allocation13_spill]] }
 0xf6e   : > { %s4073_s24 = sld [smem:[#allocation8_spill]]  ;;  %s4074_s25 = sld [smem:[#allocation9_spill]] }
 0xf6f   : > { %s4075_s26 = sld [smem:[#allocation11_spill]]  ;;  %s4076_s27 = sld [smem:[#allocation12_spill]] }
 0xf72   : > { %s29_s28 = sadd.s32 1, %s4069_s20  }
 0xf73   : > { %p26_p7 = scmp.ge.s32.totalorder %s29_s28, 6  }
 0xf75   :  { %28 = sbr.rel (!%p26_p7) target bundleno = 18 (0x12), region = 171 }
 0xf7c   :  { %2508 = vsyncpa [#allocation4], 1 }
 0xf7d   :  { %2510 = vsyncpa [#allocation4 + $0x1], 1 }

</bundles_post_ra>
